<compile_context>
chip_gen: v7x
topology: tpu7x:2x2x1
jax: 0.10.0
libtpu: 0.0.40
codegen_flags: <defaults>
</compile_context>

<pallas_src>
import functools

import jax
import jax.numpy as jnp
import numpy as np
from jax import lax
from jax.experimental import pallas as pl
from jax.experimental.pallas import tpu as pltpu


# ---------------------------------------------------------------------------
# Pallas kernel: one full (D, H*W) volume resident in VMEM per grid step.
# ---------------------------------------------------------------------------
def _soft_skel_kernel(img_ref, hmap_ref, wmap_ref, skel_ref, *,
                      num_iter, W, compute_dtype, unroll=2):
    _, D, HW = img_ref.shape
    cdt = compute_dtype

    x = img_ref[0].astype(cdt)                       # (D, HW)

    # ------------------------------------------------------------------
    # Build, once per volume, the 6 face-neighbour fetch specs:
    #   (roll axis, roll shift, additive boundary bias).
    # bias == 0 where the rolled element is a genuine in-bounds neighbour,
    # +inf where it wrapped around / crossed an H-row, so
    #   erode : acc = min(acc, roll(v) + bias)   (invalid -> +inf, ignored)
    #   dilate: acc = max(acc, roll(v) - bias)   (invalid -> -inf, ignored)
    # Validity is derived by rolling the coordinate maps with the very same
    # roll, so the result does not depend on the rotate direction convention.
    # ------------------------------------------------------------------
    h_idx = hmap_ref[...]                            # (D, HW) int32: lane // W
    w_idx = wmap_ref[...]                            # (D, HW) int32: lane %  W
    d_idx = lax.broadcasted_iota(jnp.int32, (D, HW), 0)

    pos_inf = jnp.asarray(jnp.inf, dtype=cdt)
    zero = jnp.asarray(0.0, dtype=cdt)

    def lane_spec(shift, step):
        src_h = pltpu.roll(h_idx, shift=shift, axis=1)
        src_w = pltpu.roll(w_idx, shift=shift, axis=1)
        if step == 1:                                # W-axis neighbour
            valid = (src_h == h_idx) & (jnp.abs(src_w - w_idx) == 1)
        else:                                        # H-axis neighbour
            valid = (src_w == w_idx) & (jnp.abs(src_h - h_idx) == 1)
        return (1, shift, jnp.where(valid, zero, pos_inf))

    def depth_spec(shift):
        src_d = pltpu.roll(d_idx, shift=shift, axis=0)
        valid = jnp.abs(src_d - d_idx) == 1
        return (0, shift, jnp.where(valid, zero, pos_inf))

    d_nbrs = tuple(depth_spec(s) for s in dict.fromkeys((1 % D, (-1) % D)))
    h_nbrs = tuple(lane_spec(s, W) for s in dict.fromkeys((W % HW, (-W) % HW)))
    w_nbrs = tuple(lane_spec(s, 1) for s in dict.fromkeys((1 % HW, (-1) % HW)))
    all_nbrs = d_nbrs + h_nbrs + w_nbrs

    def erode(v):
        # min of the three directional 1-D min-pools == running min over the
        # 7-point face-neighbour stencil (boundaries ignored via +inf bias).
        acc = v
        for axis, shift, bias in all_nbrs:
            acc = jnp.minimum(acc, pltpu.roll(v, shift=shift, axis=axis) + bias)
        return acc

    def _max_pool_1d(v, specs):
        acc = v
        for axis, shift, bias in specs:
            acc = jnp.maximum(acc, pltpu.roll(v, shift=shift, axis=axis) - bias)
        return acc

    def dilate(v):
        # separable 3x3x3 max-pool, stride 1, pad 1 (pad ignored via -inf).
        v = _max_pool_1d(v, d_nbrs)
        v = _max_pool_1d(v, h_nbrs)
        return _max_pool_1d(v, w_nbrs)

    def relu(v):
        return jnp.maximum(v, jnp.zeros((), v.dtype))

    acc_dtype = jnp.float32      # skel accumulator kept in f32 (bf16-safe)

    def step(img, skel):
        img = erode(img)
        img1 = dilate(erode(img))
        delta = relu(img - img1).astype(acc_dtype)
        skel = skel + relu(delta - skel * delta)
        return img, skel

    img1 = dilate(erode(x))
    skel0 = relu(x - img1).astype(acc_dtype)

    def loop_body(_, carry):
        img, skel = carry
        for _ in range(unroll):                      # manual partial unroll
            img, skel = step(img, skel)
        return img, skel

    img_c, skel = lax.fori_loop(0, num_iter // unroll, loop_body, (x, skel0))
    for _ in range(num_iter % unroll):               # remainder iterations
        img_c, skel = step(img_c, skel)

    skel_ref[0] = skel.astype(skel_ref.dtype)


# ---------------------------------------------------------------------------
# Wrapper
# ---------------------------------------------------------------------------
def soft_skeletonize(img, num_iter=40, compute_dtype=None):
    """Pallas TPU implementation of SoftSkeletonize.forward (NCDHW input)."""
    if img.ndim != 5:
        raise ValueError("[Loss Error] len(img.shape) is not equal to 5")
    N, C, D, H, W = img.shape
    NC, HW = N * C, H * W
    if compute_dtype is None:
        compute_dtype = img.dtype     # default f32; jnp.bfloat16 opt-in on v6e/v7x
    compute_dtype = jnp.dtype(compute_dtype)

    # Lane-dense layout: fold H into the lane axis -> last dim H*W.
    x = img.reshape(NC, D, HW)

    # Host-precomputed lane -> (h, w) coordinate maps (avoids in-kernel int div).
    lane = jnp.arange(HW, dtype=jnp.int32)
    h_map = jnp.broadcast_to((lane // W)[None, :], (D, HW))
    w_map = jnp.broadcast_to((lane % W)[None, :], (D, HW))

    kernel = functools.partial(
        _soft_skel_kernel, num_iter=num_iter, W=W,
        compute_dtype=compute_dtype, unroll=2)

    # VMEM budget: in/out blocks + img & skel loop carries + 6 boundary-bias
    # maps + a few pooling temporaries, with headroom; clamped to 64 MiB so the
    # same setting is valid on v7x (64 MiB physical VMEM).
    itemsize = max(jnp.dtype(img.dtype).itemsize, compute_dtype.itemsize)
    vol_bytes = D * HW * itemsize
    vmem_limit = int(min(max(18 * vol_bytes + (2 << 20), 32 << 20), 64 << 20))

    cost = pl.CostEstimate(
        flops=int(NC * (num_iter + 1) * 30 * D * HW),
        transcendentals=0,
        bytes_accessed=int(2 * NC * vol_bytes + 2 * D * HW * 4),
    )

    def build(single_buffer):
        bs_kwargs = {"pipeline_mode": pl.Buffered(1)} if single_buffer else {}
        return pl.pallas_call(
            kernel,
            out_shape=jax.ShapeDtypeStruct((NC, D, HW), img.dtype),
            grid_spec=pltpu.PrefetchScalarGridSpec(
                num_scalar_prefetch=0,
                grid=(NC,),
                in_specs=[
                    pl.BlockSpec((1, D, HW), lambda i: (i, 0, 0), **bs_kwargs),
                    pl.BlockSpec((D, HW), lambda i: (0, 0), **bs_kwargs),
                    pl.BlockSpec((D, HW), lambda i: (0, 0), **bs_kwargs),
                ],
                out_specs=pl.BlockSpec((1, D, HW), lambda i: (i, 0, 0), **bs_kwargs),
            ),
            compiler_params=pltpu.CompilerParams(
                dimension_semantics=("parallel",),   # N*C volumes -> both v7x TCs
                vmem_limit_bytes=vmem_limit,
            ),
            cost_estimate=cost,
        )

    try:
        # Massively compute-bound kernel: single-buffer the blocks to halve the
        # pipeline's VMEM footprint (matters on v7x's 64 MiB VMEM).
        out = jax.block_until_ready(build(True)(x, h_map, w_map))
    except Exception:
        # pl.Buffered(1) single-buffering not accepted by this jax version /
        # backend -> fall back to the default double-buffered pipeline.
        out = jax.block_until_ready(build(False)(x, h_map, w_map))

    return out.reshape(N, C, D, H, W)


# ---------------------------------------------------------------------------
# Pure-JAX reference (mirrors the PyTorch module) for correctness checking.
# ---------------------------------------------------------------------------
def _shift(x, axis, offset, fill):
    n = x.shape[axis]
    pad = jnp.full_like(lax.slice_in_dim(x, 0, 1, axis=axis), fill)
    if offset > 0:   # value of neighbour at i+1
        body = lax.slice_in_dim(x, 1, n, axis=axis)
        return jnp.concatenate([body, pad], axis=axis)
    else:            # value of neighbour at i-1
        body = lax.slice_in_dim(x, 0, n - 1, axis=axis)
        return jnp.concatenate([pad, body], axis=axis)


def _min_pool3(x, axis):
    inf = jnp.array(jnp.inf, dtype=x.dtype)
    return jnp.minimum(jnp.minimum(x, _shift(x, axis, +1, inf)),
                       _shift(x, axis, -1, inf))


def _max_pool3(x, axis):
    ninf = jnp.array(-jnp.inf, dtype=x.dtype)
    return jnp.maximum(jnp.maximum(x, _shift(x, axis, +1, ninf)),
                       _shift(x, axis, -1, ninf))


def _soft_erode_ref(vol):
    return jnp.minimum(jnp.minimum(_min_pool3(vol, 0), _min_pool3(vol, 1)),
                       _min_pool3(vol, 2))


def _soft_dilate_ref(vol):
    return _max_pool3(_max_pool3(_max_pool3(vol, 0), 1), 2)


def _soft_open_ref(vol):
    return _soft_dilate_ref(_soft_erode_ref(vol))


def soft_skeletonize_ref(img, num_iter=40):
    def per_vol(vol):
        img1 = _soft_open_ref(vol)
        skel = jnp.maximum(vol - img1, 0.0)
        v = vol
        for _ in range(num_iter):
            v = _soft_erode_ref(v)
            img1 = _soft_open_ref(v)
            delta = jnp.maximum(v - img1, 0.0)
            skel = skel + jnp.maximum(delta - skel * delta, 0.0)
        return skel

    N, C, D, H, W = img.shape
    out = jax.vmap(per_vol)(img.reshape(N * C, D, H, W))
    return out.reshape(N, C, D, H, W)


if __name__ == "__main__":
    key = jax.random.PRNGKey(0)
    # Small NCDHW input: N*C >= 2 keeps both v7x TensorCores busy and
    # H*W = 256 is lane-dense (multiple of 128).
    img = jax.random.uniform(key, (2, 2, 8, 16, 16), dtype=jnp.float32)

    num_iter = 40  # module default
    out = jax.block_until_ready(soft_skeletonize(img, num_iter=num_iter))
    ref = jax.block_until_ready(soft_skeletonize_ref(img, num_iter=num_iter))
    np.testing.assert_allclose(np.asarray(out), np.asarray(ref), rtol=1e-5, atol=1e-5)

    print("KERNEL_OK")
</pallas_src>

<mosaic_0001>
module attributes {stable_mosaic.version = 11 : i64} {
  func.func @_soft_skel_kernel(%arg0: i32, %arg1: memref<1x8x256xf32, #tpu.memory_space<vmem>>, %arg2: memref<8x256xi32, #tpu.memory_space<vmem>>, %arg3: memref<8x256xi32, #tpu.memory_space<vmem>>, %arg4: memref<1x8x256xf32, #tpu.memory_space<vmem>>) attributes {dimension_semantics = [#tpu.dimension_semantics<parallel>], iteration_bounds = array<i64: 4>, scalar_prefetch = 0 : i64, scratch_operands = 0 : i64, tpu.core_type = #tpu.core_type<tc>, window_params = [{pipeline_mode = #tpu.pipeline_mode<synchronous>, transform_indices = @transform_0, window_bounds = array<i64: 1, 8, 256>}, {pipeline_mode = #tpu.pipeline_mode<synchronous>, transform_indices = @transform_1, window_bounds = array<i64: 8, 256>}, {pipeline_mode = #tpu.pipeline_mode<synchronous>, transform_indices = @transform_2, window_bounds = array<i64: 8, 256>}, {pipeline_mode = #tpu.pipeline_mode<synchronous>, transform_indices = @transform_3, window_bounds = array<i64: 1, 8, 256>}]} {
    %c0 = arith.constant 0 : index
    %c0_0 = arith.constant 0 : index
    %c0_1 = arith.constant 0 : index
    %0 = vector.load %arg1[%c0, %c0_0, %c0_1] : memref<1x8x256xf32, #tpu.memory_space<vmem>>, vector<1x8x256xf32>
    %1 = vector.shape_cast %0 : vector<1x8x256xf32> to vector<8x256xf32>
    %c0_2 = arith.constant 0 : index
    %c0_3 = arith.constant 0 : index
    %2 = vector.load %arg2[%c0_2, %c0_3] : memref<8x256xi32, #tpu.memory_space<vmem>>, vector<8x256xi32>
    %c0_4 = arith.constant 0 : index
    %c0_5 = arith.constant 0 : index
    %3 = vector.load %arg3[%c0_4, %c0_5] : memref<8x256xi32, #tpu.memory_space<vmem>>, vector<8x256xi32>
    %4 = tpu.iota {dimensions = array<i32: 0>} : vector<8x256xi32>
    %c1_i32 = arith.constant 1 : i32
    %5 = tpu.dynamic_rotate %4 by %c1_i32 dim 0 : vector<8x256xi32>, i32 -> vector<8x256xi32>
    %6 = arith.subi %5, %4 : vector<8x256xi32>
    %7 = math.absi %6 : vector<8x256xi32>
    %c1_i32_6 = arith.constant 1 : i32
    %8 = vector.broadcast %c1_i32_6 : i32 to vector<8x256xi32>
    %9 = arith.cmpi eq, %7, %8 : vector<8x256xi32>
    %cst = arith.constant 0.000000e+00 : f32
    %cst_7 = arith.constant 0x7F800000 : f32
    %10 = vector.broadcast %cst : f32 to vector<8x256xf32>
    %11 = vector.broadcast %cst_7 : f32 to vector<8x256xf32>
    %12 = arith.select %9, %10, %11 : vector<8x256xi1>, vector<8x256xf32>
    %c7_i32 = arith.constant 7 : i32
    %13 = tpu.dynamic_rotate %4 by %c7_i32 dim 0 : vector<8x256xi32>, i32 -> vector<8x256xi32>
    %14 = arith.subi %13, %4 : vector<8x256xi32>
    %15 = math.absi %14 : vector<8x256xi32>
    %c1_i32_8 = arith.constant 1 : i32
    %16 = vector.broadcast %c1_i32_8 : i32 to vector<8x256xi32>
    %17 = arith.cmpi eq, %15, %16 : vector<8x256xi32>
    %cst_9 = arith.constant 0.000000e+00 : f32
    %cst_10 = arith.constant 0x7F800000 : f32
    %18 = vector.broadcast %cst_9 : f32 to vector<8x256xf32>
    %19 = vector.broadcast %cst_10 : f32 to vector<8x256xf32>
    %20 = arith.select %17, %18, %19 : vector<8x256xi1>, vector<8x256xf32>
    %c16_i32 = arith.constant 16 : i32
    %21 = tpu.dynamic_rotate %2 by %c16_i32 dim 1 : vector<8x256xi32>, i32 -> vector<8x256xi32>
    %c16_i32_11 = arith.constant 16 : i32
    %22 = tpu.dynamic_rotate %3 by %c16_i32_11 dim 1 : vector<8x256xi32>, i32 -> vector<8x256xi32>
    %23 = arith.cmpi eq, %22, %3 : vector<8x256xi32>
    %24 = arith.subi %21, %2 : vector<8x256xi32>
    %25 = math.absi %24 : vector<8x256xi32>
    %c1_i32_12 = arith.constant 1 : i32
    %26 = vector.broadcast %c1_i32_12 : i32 to vector<8x256xi32>
    %27 = arith.cmpi eq, %25, %26 : vector<8x256xi32>
    %28 = arith.andi %23, %27 : vector<8x256xi1>
    %cst_13 = arith.constant 0.000000e+00 : f32
    %cst_14 = arith.constant 0x7F800000 : f32
    %29 = vector.broadcast %cst_13 : f32 to vector<8x256xf32>
    %30 = vector.broadcast %cst_14 : f32 to vector<8x256xf32>
    %31 = arith.select %28, %29, %30 : vector<8x256xi1>, vector<8x256xf32>
    %c240_i32 = arith.constant 240 : i32
    %32 = tpu.dynamic_rotate %2 by %c240_i32 dim 1 : vector<8x256xi32>, i32 -> vector<8x256xi32>
    %c240_i32_15 = arith.constant 240 : i32
    %33 = tpu.dynamic_rotate %3 by %c240_i32_15 dim 1 : vector<8x256xi32>, i32 -> vector<8x256xi32>
    %34 = arith.cmpi eq, %33, %3 : vector<8x256xi32>
    %35 = arith.subi %32, %2 : vector<8x256xi32>
    %36 = math.absi %35 : vector<8x256xi32>
    %c1_i32_16 = arith.constant 1 : i32
    %37 = vector.broadcast %c1_i32_16 : i32 to vector<8x256xi32>
    %38 = arith.cmpi eq, %36, %37 : vector<8x256xi32>
    %39 = arith.andi %34, %38 : vector<8x256xi1>
    %cst_17 = arith.constant 0.000000e+00 : f32
    %cst_18 = arith.constant 0x7F800000 : f32
    %40 = vector.broadcast %cst_17 : f32 to vector<8x256xf32>
    %41 = vector.broadcast %cst_18 : f32 to vector<8x256xf32>
    %42 = arith.select %39, %40, %41 : vector<8x256xi1>, vector<8x256xf32>
    %c1_i32_19 = arith.constant 1 : i32
    %43 = tpu.dynamic_rotate %2 by %c1_i32_19 dim 1 : vector<8x256xi32>, i32 -> vector<8x256xi32>
    %c1_i32_20 = arith.constant 1 : i32
    %44 = tpu.dynamic_rotate %3 by %c1_i32_20 dim 1 : vector<8x256xi32>, i32 -> vector<8x256xi32>
    %45 = arith.cmpi eq, %43, %2 : vector<8x256xi32>
    %46 = arith.subi %44, %3 : vector<8x256xi32>
    %47 = math.absi %46 : vector<8x256xi32>
    %c1_i32_21 = arith.constant 1 : i32
    %48 = vector.broadcast %c1_i32_21 : i32 to vector<8x256xi32>
    %49 = arith.cmpi eq, %47, %48 : vector<8x256xi32>
    %50 = arith.andi %45, %49 : vector<8x256xi1>
    %cst_22 = arith.constant 0.000000e+00 : f32
    %cst_23 = arith.constant 0x7F800000 : f32
    %51 = vector.broadcast %cst_22 : f32 to vector<8x256xf32>
    %52 = vector.broadcast %cst_23 : f32 to vector<8x256xf32>
    %53 = arith.select %50, %51, %52 : vector<8x256xi1>, vector<8x256xf32>
    %c255_i32 = arith.constant 255 : i32
    %54 = tpu.dynamic_rotate %2 by %c255_i32 dim 1 : vector<8x256xi32>, i32 -> vector<8x256xi32>
    %c255_i32_24 = arith.constant 255 : i32
    %55 = tpu.dynamic_rotate %3 by %c255_i32_24 dim 1 : vector<8x256xi32>, i32 -> vector<8x256xi32>
    %56 = arith.cmpi eq, %54, %2 : vector<8x256xi32>
    %57 = arith.subi %55, %3 : vector<8x256xi32>
    %58 = math.absi %57 : vector<8x256xi32>
    %c1_i32_25 = arith.constant 1 : i32
    %59 = vector.broadcast %c1_i32_25 : i32 to vector<8x256xi32>
    %60 = arith.cmpi eq, %58, %59 : vector<8x256xi32>
    %61 = arith.andi %56, %60 : vector<8x256xi1>
    %cst_26 = arith.constant 0.000000e+00 : f32
    %cst_27 = arith.constant 0x7F800000 : f32
    %62 = vector.broadcast %cst_26 : f32 to vector<8x256xf32>
    %63 = vector.broadcast %cst_27 : f32 to vector<8x256xf32>
    %64 = arith.select %61, %62, %63 : vector<8x256xi1>, vector<8x256xf32>
    %c1_i32_28 = arith.constant 1 : i32
    %65 = tpu.dynamic_rotate %1 by %c1_i32_28 dim 0 : vector<8x256xf32>, i32 -> vector<8x256xf32>
    %66 = arith.addf %65, %12 : vector<8x256xf32>
    %67 = arith.minimumf %1, %66 : vector<8x256xf32>
    %c7_i32_29 = arith.constant 7 : i32
    %68 = tpu.dynamic_rotate %1 by %c7_i32_29 dim 0 : vector<8x256xf32>, i32 -> vector<8x256xf32>
    %69 = arith.addf %68, %20 : vector<8x256xf32>
    %70 = arith.minimumf %67, %69 : vector<8x256xf32>
    %c16_i32_30 = arith.constant 16 : i32
    %71 = tpu.dynamic_rotate %1 by %c16_i32_30 dim 1 : vector<8x256xf32>, i32 -> vector<8x256xf32>
    %72 = arith.addf %71, %31 : vector<8x256xf32>
    %73 = arith.minimumf %70, %72 : vector<8x256xf32>
    %c240_i32_31 = arith.constant 240 : i32
    %74 = tpu.dynamic_rotate %1 by %c240_i32_31 dim 1 : vector<8x256xf32>, i32 -> vector<8x256xf32>
    %75 = arith.addf %74, %42 : vector<8x256xf32>
    %76 = arith.minimumf %73, %75 : vector<8x256xf32>
    %c1_i32_32 = arith.constant 1 : i32
    %77 = tpu.dynamic_rotate %1 by %c1_i32_32 dim 1 : vector<8x256xf32>, i32 -> vector<8x256xf32>
    %78 = arith.addf %77, %53 : vector<8x256xf32>
    %79 = arith.minimumf %76, %78 : vector<8x256xf32>
    %c255_i32_33 = arith.constant 255 : i32
    %80 = tpu.dynamic_rotate %1 by %c255_i32_33 dim 1 : vector<8x256xf32>, i32 -> vector<8x256xf32>
    %81 = arith.addf %80, %64 : vector<8x256xf32>
    %82 = arith.minimumf %79, %81 : vector<8x256xf32>
    %c1_i32_34 = arith.constant 1 : i32
    %83 = tpu.dynamic_rotate %82 by %c1_i32_34 dim 0 : vector<8x256xf32>, i32 -> vector<8x256xf32>
    %84 = arith.subf %83, %12 : vector<8x256xf32>
    %85 = arith.maximumf %82, %84 : vector<8x256xf32>
    %c7_i32_35 = arith.constant 7 : i32
    %86 = tpu.dynamic_rotate %82 by %c7_i32_35 dim 0 : vector<8x256xf32>, i32 -> vector<8x256xf32>
    %87 = arith.subf %86, %20 : vector<8x256xf32>
    %88 = arith.maximumf %85, %87 : vector<8x256xf32>
    %c16_i32_36 = arith.constant 16 : i32
    %89 = tpu.dynamic_rotate %88 by %c16_i32_36 dim 1 : vector<8x256xf32>, i32 -> vector<8x256xf32>
    %90 = arith.subf %89, %31 : vector<8x256xf32>
    %91 = arith.maximumf %88, %90 : vector<8x256xf32>
    %c240_i32_37 = arith.constant 240 : i32
    %92 = tpu.dynamic_rotate %88 by %c240_i32_37 dim 1 : vector<8x256xf32>, i32 -> vector<8x256xf32>
    %93 = arith.subf %92, %42 : vector<8x256xf32>
    %94 = arith.maximumf %91, %93 : vector<8x256xf32>
    %c1_i32_38 = arith.constant 1 : i32
    %95 = tpu.dynamic_rotate %94 by %c1_i32_38 dim 1 : vector<8x256xf32>, i32 -> vector<8x256xf32>
    %96 = arith.subf %95, %53 : vector<8x256xf32>
    %97 = arith.maximumf %94, %96 : vector<8x256xf32>
    %c255_i32_39 = arith.constant 255 : i32
    %98 = tpu.dynamic_rotate %94 by %c255_i32_39 dim 1 : vector<8x256xf32>, i32 -> vector<8x256xf32>
    %99 = arith.subf %98, %64 : vector<8x256xf32>
    %100 = arith.maximumf %97, %99 : vector<8x256xf32>
    %101 = arith.subf %1, %100 : vector<8x256xf32>
    %cst_40 = arith.constant 0.000000e+00 : f32
    %102 = vector.broadcast %cst_40 : f32 to vector<8x256xf32>
    %103 = arith.maximumf %101, %102 : vector<8x256xf32>
    %c0_i32 = arith.constant 0 : i32
    %c20_i32 = arith.constant 20 : i32
    %104 = arith.addi %c0_i32, %c20_i32 : i32
    %c1_i32_41 = arith.constant 1 : i32
    %105:2 = scf.for %arg5 = %c0_i32 to %104 step %c1_i32_41 iter_args(%arg6 = %1, %arg7 = %103) -> (vector<8x256xf32>, vector<8x256xf32>)  : i32 {
      %c1_i32_45 = arith.constant 1 : i32
      %109 = tpu.dynamic_rotate %arg6 by %c1_i32_45 dim 0 : vector<8x256xf32>, i32 -> vector<8x256xf32>
      %110 = arith.addf %109, %12 : vector<8x256xf32>
      %111 = arith.minimumf %arg6, %110 : vector<8x256xf32>
      %c7_i32_46 = arith.constant 7 : i32
      %112 = tpu.dynamic_rotate %arg6 by %c7_i32_46 dim 0 : vector<8x256xf32>, i32 -> vector<8x256xf32>
      %113 = arith.addf %112, %20 : vector<8x256xf32>
      %114 = arith.minimumf %111, %113 : vector<8x256xf32>
      %c16_i32_47 = arith.constant 16 : i32
      %115 = tpu.dynamic_rotate %arg6 by %c16_i32_47 dim 1 : vector<8x256xf32>, i32 -> vector<8x256xf32>
      %116 = arith.addf %115, %31 : vector<8x256xf32>
      %117 = arith.minimumf %114, %116 : vector<8x256xf32>
      %c240_i32_48 = arith.constant 240 : i32
      %118 = tpu.dynamic_rotate %arg6 by %c240_i32_48 dim 1 : vector<8x256xf32>, i32 -> vector<8x256xf32>
      %119 = arith.addf %118, %42 : vector<8x256xf32>
      %120 = arith.minimumf %117, %119 : vector<8x256xf32>
      %c1_i32_49 = arith.constant 1 : i32
      %121 = tpu.dynamic_rotate %arg6 by %c1_i32_49 dim 1 : vector<8x256xf32>, i32 -> vector<8x256xf32>
      %122 = arith.addf %121, %53 : vector<8x256xf32>
      %123 = arith.minimumf %120, %122 : vector<8x256xf32>
      %c255_i32_50 = arith.constant 255 : i32
      %124 = tpu.dynamic_rotate %arg6 by %c255_i32_50 dim 1 : vector<8x256xf32>, i32 -> vector<8x256xf32>
      %125 = arith.addf %124, %64 : vector<8x256xf32>
      %126 = arith.minimumf %123, %125 : vector<8x256xf32>
      %c1_i32_51 = arith.constant 1 : i32
      %127 = tpu.dynamic_rotate %126 by %c1_i32_51 dim 0 : vector<8x256xf32>, i32 -> vector<8x256xf32>
      %128 = arith.addf %127, %12 : vector<8x256xf32>
      %129 = arith.minimumf %126, %128 : vector<8x256xf32>
      %c7_i32_52 = arith.constant 7 : i32
      %130 = tpu.dynamic_rotate %126 by %c7_i32_52 dim 0 : vector<8x256xf32>, i32 -> vector<8x256xf32>
      %131 = arith.addf %130, %20 : vector<8x256xf32>
      %132 = arith.minimumf %129, %131 : vector<8x256xf32>
      %c16_i32_53 = arith.constant 16 : i32
      %133 = tpu.dynamic_rotate %126 by %c16_i32_53 dim 1 : vector<8x256xf32>, i32 -> vector<8x256xf32>
      %134 = arith.addf %133, %31 : vector<8x256xf32>
      %135 = arith.minimumf %132, %134 : vector<8x256xf32>
      %c240_i32_54 = arith.constant 240 : i32
      %136 = tpu.dynamic_rotate %126 by %c240_i32_54 dim 1 : vector<8x256xf32>, i32 -> vector<8x256xf32>
      %137 = arith.addf %136, %42 : vector<8x256xf32>
      %138 = arith.minimumf %135, %137 : vector<8x256xf32>
      %c1_i32_55 = arith.constant 1 : i32
      %139 = tpu.dynamic_rotate %126 by %c1_i32_55 dim 1 : vector<8x256xf32>, i32 -> vector<8x256xf32>
      %140 = arith.addf %139, %53 : vector<8x256xf32>
      %141 = arith.minimumf %138, %140 : vector<8x256xf32>
      %c255_i32_56 = arith.constant 255 : i32
      %142 = tpu.dynamic_rotate %126 by %c255_i32_56 dim 1 : vector<8x256xf32>, i32 -> vector<8x256xf32>
      %143 = arith.addf %142, %64 : vector<8x256xf32>
      %144 = arith.minimumf %141, %143 : vector<8x256xf32>
      %c1_i32_57 = arith.constant 1 : i32
      %145 = tpu.dynamic_rotate %144 by %c1_i32_57 dim 0 : vector<8x256xf32>, i32 -> vector<8x256xf32>
      %146 = arith.subf %145, %12 : vector<8x256xf32>
      %147 = arith.maximumf %144, %146 : vector<8x256xf32>
      %c7_i32_58 = arith.constant 7 : i32
      %148 = tpu.dynamic_rotate %144 by %c7_i32_58 dim 0 : vector<8x256xf32>, i32 -> vector<8x256xf32>
      %149 = arith.subf %148, %20 : vector<8x256xf32>
      %150 = arith.maximumf %147, %149 : vector<8x256xf32>
      %c16_i32_59 = arith.constant 16 : i32
      %151 = tpu.dynamic_rotate %150 by %c16_i32_59 dim 1 : vector<8x256xf32>, i32 -> vector<8x256xf32>
      %152 = arith.subf %151, %31 : vector<8x256xf32>
      %153 = arith.maximumf %150, %152 : vector<8x256xf32>
      %c240_i32_60 = arith.constant 240 : i32
      %154 = tpu.dynamic_rotate %150 by %c240_i32_60 dim 1 : vector<8x256xf32>, i32 -> vector<8x256xf32>
      %155 = arith.subf %154, %42 : vector<8x256xf32>
      %156 = arith.maximumf %153, %155 : vector<8x256xf32>
      %c1_i32_61 = arith.constant 1 : i32
      %157 = tpu.dynamic_rotate %156 by %c1_i32_61 dim 1 : vector<8x256xf32>, i32 -> vector<8x256xf32>
      %158 = arith.subf %157, %53 : vector<8x256xf32>
      %159 = arith.maximumf %156, %158 : vector<8x256xf32>
      %c255_i32_62 = arith.constant 255 : i32
      %160 = tpu.dynamic_rotate %156 by %c255_i32_62 dim 1 : vector<8x256xf32>, i32 -> vector<8x256xf32>
      %161 = arith.subf %160, %64 : vector<8x256xf32>
      %162 = arith.maximumf %159, %161 : vector<8x256xf32>
      %163 = arith.subf %126, %162 : vector<8x256xf32>
      %cst_63 = arith.constant 0.000000e+00 : f32
      %164 = vector.broadcast %cst_63 : f32 to vector<8x256xf32>
      %165 = arith.maximumf %163, %164 : vector<8x256xf32>
      %166 = arith.mulf %arg7, %165 : vector<8x256xf32>
      %167 = arith.subf %165, %166 : vector<8x256xf32>
      %cst_64 = arith.constant 0.000000e+00 : f32
      %168 = vector.broadcast %cst_64 : f32 to vector<8x256xf32>
      %169 = arith.maximumf %167, %168 : vector<8x256xf32>
      %170 = arith.addf %arg7, %169 : vector<8x256xf32>
      %c1_i32_65 = arith.constant 1 : i32
      %171 = tpu.dynamic_rotate %126 by %c1_i32_65 dim 0 : vector<8x256xf32>, i32 -> vector<8x256xf32>
      %172 = arith.addf %171, %12 : vector<8x256xf32>
      %173 = arith.minimumf %126, %172 : vector<8x256xf32>
      %c7_i32_66 = arith.constant 7 : i32
      %174 = tpu.dynamic_rotate %126 by %c7_i32_66 dim 0 : vector<8x256xf32>, i32 -> vector<8x256xf32>
      %175 = arith.addf %174, %20 : vector<8x256xf32>
      %176 = arith.minimumf %173, %175 : vector<8x256xf32>
      %c16_i32_67 = arith.constant 16 : i32
      %177 = tpu.dynamic_rotate %126 by %c16_i32_67 dim 1 : vector<8x256xf32>, i32 -> vector<8x256xf32>
      %178 = arith.addf %177, %31 : vector<8x256xf32>
      %179 = arith.minimumf %176, %178 : vector<8x256xf32>
      %c240_i32_68 = arith.constant 240 : i32
      %180 = tpu.dynamic_rotate %126 by %c240_i32_68 dim 1 : vector<8x256xf32>, i32 -> vector<8x256xf32>
      %181 = arith.addf %180, %42 : vector<8x256xf32>
      %182 = arith.minimumf %179, %181 : vector<8x256xf32>
      %c1_i32_69 = arith.constant 1 : i32
      %183 = tpu.dynamic_rotate %126 by %c1_i32_69 dim 1 : vector<8x256xf32>, i32 -> vector<8x256xf32>
      %184 = arith.addf %183, %53 : vector<8x256xf32>
      %185 = arith.minimumf %182, %184 : vector<8x256xf32>
      %c255_i32_70 = arith.constant 255 : i32
      %186 = tpu.dynamic_rotate %126 by %c255_i32_70 dim 1 : vector<8x256xf32>, i32 -> vector<8x256xf32>
      %187 = arith.addf %186, %64 : vector<8x256xf32>
      %188 = arith.minimumf %185, %187 : vector<8x256xf32>
      %c1_i32_71 = arith.constant 1 : i32
      %189 = tpu.dynamic_rotate %188 by %c1_i32_71 dim 0 : vector<8x256xf32>, i32 -> vector<8x256xf32>
      %190 = arith.addf %189, %12 : vector<8x256xf32>
      %191 = arith.minimumf %188, %190 : vector<8x256xf32>
      %c7_i32_72 = arith.constant 7 : i32
      %192 = tpu.dynamic_rotate %188 by %c7_i32_72 dim 0 : vector<8x256xf32>, i32 -> vector<8x256xf32>
      %193 = arith.addf %192, %20 : vector<8x256xf32>
      %194 = arith.minimumf %191, %193 : vector<8x256xf32>
      %c16_i32_73 = arith.constant 16 : i32
      %195 = tpu.dynamic_rotate %188 by %c16_i32_73 dim 1 : vector<8x256xf32>, i32 -> vector<8x256xf32>
      %196 = arith.addf %195, %31 : vector<8x256xf32>
      %197 = arith.minimumf %194, %196 : vector<8x256xf32>
      %c240_i32_74 = arith.constant 240 : i32
      %198 = tpu.dynamic_rotate %188 by %c240_i32_74 dim 1 : vector<8x256xf32>, i32 -> vector<8x256xf32>
      %199 = arith.addf %198, %42 : vector<8x256xf32>
      %200 = arith.minimumf %197, %199 : vector<8x256xf32>
      %c1_i32_75 = arith.constant 1 : i32
      %201 = tpu.dynamic_rotate %188 by %c1_i32_75 dim 1 : vector<8x256xf32>, i32 -> vector<8x256xf32>
      %202 = arith.addf %201, %53 : vector<8x256xf32>
      %203 = arith.minimumf %200, %202 : vector<8x256xf32>
      %c255_i32_76 = arith.constant 255 : i32
      %204 = tpu.dynamic_rotate %188 by %c255_i32_76 dim 1 : vector<8x256xf32>, i32 -> vector<8x256xf32>
      %205 = arith.addf %204, %64 : vector<8x256xf32>
      %206 = arith.minimumf %203, %205 : vector<8x256xf32>
      %c1_i32_77 = arith.constant 1 : i32
      %207 = tpu.dynamic_rotate %206 by %c1_i32_77 dim 0 : vector<8x256xf32>, i32 -> vector<8x256xf32>
      %208 = arith.subf %207, %12 : vector<8x256xf32>
      %209 = arith.maximumf %206, %208 : vector<8x256xf32>
      %c7_i32_78 = arith.constant 7 : i32
      %210 = tpu.dynamic_rotate %206 by %c7_i32_78 dim 0 : vector<8x256xf32>, i32 -> vector<8x256xf32>
      %211 = arith.subf %210, %20 : vector<8x256xf32>
      %212 = arith.maximumf %209, %211 : vector<8x256xf32>
      %c16_i32_79 = arith.constant 16 : i32
      %213 = tpu.dynamic_rotate %212 by %c16_i32_79 dim 1 : vector<8x256xf32>, i32 -> vector<8x256xf32>
      %214 = arith.subf %213, %31 : vector<8x256xf32>
      %215 = arith.maximumf %212, %214 : vector<8x256xf32>
      %c240_i32_80 = arith.constant 240 : i32
      %216 = tpu.dynamic_rotate %212 by %c240_i32_80 dim 1 : vector<8x256xf32>, i32 -> vector<8x256xf32>
      %217 = arith.subf %216, %42 : vector<8x256xf32>
      %218 = arith.maximumf %215, %217 : vector<8x256xf32>
      %c1_i32_81 = arith.constant 1 : i32
      %219 = tpu.dynamic_rotate %218 by %c1_i32_81 dim 1 : vector<8x256xf32>, i32 -> vector<8x256xf32>
      %220 = arith.subf %219, %53 : vector<8x256xf32>
      %221 = arith.maximumf %218, %220 : vector<8x256xf32>
      %c255_i32_82 = arith.constant 255 : i32
      %222 = tpu.dynamic_rotate %218 by %c255_i32_82 dim 1 : vector<8x256xf32>, i32 -> vector<8x256xf32>
      %223 = arith.subf %222, %64 : vector<8x256xf32>
      %224 = arith.maximumf %221, %223 : vector<8x256xf32>
      %225 = arith.subf %188, %224 : vector<8x256xf32>
      %cst_83 = arith.constant 0.000000e+00 : f32
      %226 = vector.broadcast %cst_83 : f32 to vector<8x256xf32>
      %227 = arith.maximumf %225, %226 : vector<8x256xf32>
      %228 = arith.mulf %170, %227 : vector<8x256xf32>
      %229 = arith.subf %227, %228 : vector<8x256xf32>
      %cst_84 = arith.constant 0.000000e+00 : f32
      %230 = vector.broadcast %cst_84 : f32 to vector<8x256xf32>
      %231 = arith.maximumf %229, %230 : vector<8x256xf32>
      %232 = arith.addf %170, %231 : vector<8x256xf32>
      scf.yield %188, %232 : vector<8x256xf32>, vector<8x256xf32>
    }
    %c0_42 = arith.constant 0 : index
    %c0_43 = arith.constant 0 : index
    %c0_44 = arith.constant 0 : index
    %106 = vector.load %arg4[%c0_42, %c0_43, %c0_44] : memref<1x8x256xf32, #tpu.memory_space<vmem>>, vector<1x8x256xf32>
    %107 = vector.shape_cast %106 : vector<1x8x256xf32> to vector<8x256xf32>
    %108 = vector.shape_cast %105#1 : vector<8x256xf32> to vector<1x8x256xf32>
    tpu.vector_store %arg4[%c0_42, %c0_43, %c0_44], %108 {strides = array<i32>} : memref<1x8x256xf32, #tpu.memory_space<vmem>>, vector<1x8x256xf32>,
    return
  }
  func.func @transform_0(%arg0: i32) -> (i32, i32, i32) {
    %c0_i32 = arith.constant 0 : i32
    %c0_i32_0 = arith.constant 0 : i32
    %c0_i32_1 = arith.constant 0 : i32
    return %arg0, %c0_i32, %c0_i32_0 : i32, i32, i32
  }
  func.func @transform_1(%arg0: i32) -> (i32, i32) {
    %c0_i32 = arith.constant 0 : i32
    %c0_i32_0 = arith.constant 0 : i32
    %c0_i32_1 = arith.constant 0 : i32
    return %c0_i32, %c0_i32_0 : i32, i32
  }
  func.func @transform_2(%arg0: i32) -> (i32, i32) {
    %c0_i32 = arith.constant 0 : i32
    %c0_i32_0 = arith.constant 0 : i32
    %c0_i32_1 = arith.constant 0 : i32
    return %c0_i32, %c0_i32_0 : i32, i32
  }
  func.func @transform_3(%arg0: i32) -> (i32, i32, i32) {
    %c0_i32 = arith.constant 0 : i32
    %c0_i32_0 = arith.constant 0 : i32
    %c0_i32_1 = arith.constant 0 : i32
    return %arg0, %c0_i32, %c0_i32_0 : i32, i32, i32
  }
}

module attributes {stable_mosaic.version = 11 : i64} {
  func.func @_soft_skel_kernel(%arg0: i32, %arg1: memref<1x8x256xf32, #tpu.memory_space<vmem>>, %arg2: memref<8x256xi32, #tpu.memory_space<vmem>>, %arg3: memref<8x256xi32, #tpu.memory_space<vmem>>, %arg4: memref<1x8x256xf32, #tpu.memory_space<vmem>>) attributes {dimension_semantics = [#tpu.dimension_semantics<parallel>], iteration_bounds = array<i64: 4>, scalar_prefetch = 0 : i64, scratch_operands = 0 : i64, tpu.core_type = #tpu.core_type<tc>, window_params = [{transform_indices = @transform_0, window_bounds = array<i64: 1, 8, 256>}, {pipeline_mode = #tpu.pipeline_mode<synchronous>, transform_indices = @transform_1, window_bounds = array<i64: 8, 256>}, {pipeline_mode = #tpu.pipeline_mode<synchronous>, transform_indices = @transform_2, window_bounds = array<i64: 8, 256>}, {transform_indices = @transform_3, window_bounds = array<i64: 1, 8, 256>}]} {
    %c0 = arith.constant 0 : index
    %c0_0 = arith.constant 0 : index
    %c0_1 = arith.constant 0 : index
    %0 = vector.load %arg1[%c0, %c0_0, %c0_1] : memref<1x8x256xf32, #tpu.memory_space<vmem>>, vector<1x8x256xf32>
    %1 = vector.shape_cast %0 : vector<1x8x256xf32> to vector<8x256xf32>
    %c0_2 = arith.constant 0 : index
    %c0_3 = arith.constant 0 : index
    %2 = vector.load %arg2[%c0_2, %c0_3] : memref<8x256xi32, #tpu.memory_space<vmem>>, vector<8x256xi32>
    %c0_4 = arith.constant 0 : index
    %c0_5 = arith.constant 0 : index
    %3 = vector.load %arg3[%c0_4, %c0_5] : memref<8x256xi32, #tpu.memory_space<vmem>>, vector<8x256xi32>
    %4 = tpu.iota {dimensions = array<i32: 0>} : vector<8x256xi32>
    %c1_i32 = arith.constant 1 : i32
    %5 = tpu.dynamic_rotate %4 by %c1_i32 dim 0 : vector<8x256xi32>, i32 -> vector<8x256xi32>
    %6 = arith.subi %5, %4 : vector<8x256xi32>
    %7 = math.absi %6 : vector<8x256xi32>
    %c1_i32_6 = arith.constant 1 : i32
    %8 = vector.broadcast %c1_i32_6 : i32 to vector<8x256xi32>
    %9 = arith.cmpi eq, %7, %8 : vector<8x256xi32>
    %cst = arith.constant 0.000000e+00 : f32
    %cst_7 = arith.constant 0x7F800000 : f32
    %10 = vector.broadcast %cst : f32 to vector<8x256xf32>
    %11 = vector.broadcast %cst_7 : f32 to vector<8x256xf32>
    %12 = arith.select %9, %10, %11 : vector<8x256xi1>, vector<8x256xf32>
    %c7_i32 = arith.constant 7 : i32
    %13 = tpu.dynamic_rotate %4 by %c7_i32 dim 0 : vector<8x256xi32>, i32 -> vector<8x256xi32>
    %14 = arith.subi %13, %4 : vector<8x256xi32>
    %15 = math.absi %14 : vector<8x256xi32>
    %c1_i32_8 = arith.constant 1 : i32
    %16 = vector.broadcast %c1_i32_8 : i32 to vector<8x256xi32>
    %17 = arith.cmpi eq, %15, %16 : vector<8x256xi32>
    %cst_9 = arith.constant 0.000000e+00 : f32
    %cst_10 = arith.constant 0x7F800000 : f32
    %18 = vector.broadcast %cst_9 : f32 to vector<8x256xf32>
    %19 = vector.broadcast %cst_10 : f32 to vector<8x256xf32>
    %20 = arith.select %17, %18, %19 : vector<8x256xi1>, vector<8x256xf32>
    %c16_i32 = arith.constant 16 : i32
    %21 = tpu.dynamic_rotate %2 by %c16_i32 dim 1 : vector<8x256xi32>, i32 -> vector<8x256xi32>
    %c16_i32_11 = arith.constant 16 : i32
    %22 = tpu.dynamic_rotate %3 by %c16_i32_11 dim 1 : vector<8x256xi32>, i32 -> vector<8x256xi32>
    %23 = arith.cmpi eq, %22, %3 : vector<8x256xi32>
    %24 = arith.subi %21, %2 : vector<8x256xi32>
    %25 = math.absi %24 : vector<8x256xi32>
    %c1_i32_12 = arith.constant 1 : i32
    %26 = vector.broadcast %c1_i32_12 : i32 to vector<8x256xi32>
    %27 = arith.cmpi eq, %25, %26 : vector<8x256xi32>
    %28 = arith.andi %23, %27 : vector<8x256xi1>
    %cst_13 = arith.constant 0.000000e+00 : f32
    %cst_14 = arith.constant 0x7F800000 : f32
    %29 = vector.broadcast %cst_13 : f32 to vector<8x256xf32>
    %30 = vector.broadcast %cst_14 : f32 to vector<8x256xf32>
    %31 = arith.select %28, %29, %30 : vector<8x256xi1>, vector<8x256xf32>
    %c240_i32 = arith.constant 240 : i32
    %32 = tpu.dynamic_rotate %2 by %c240_i32 dim 1 : vector<8x256xi32>, i32 -> vector<8x256xi32>
    %c240_i32_15 = arith.constant 240 : i32
    %33 = tpu.dynamic_rotate %3 by %c240_i32_15 dim 1 : vector<8x256xi32>, i32 -> vector<8x256xi32>
    %34 = arith.cmpi eq, %33, %3 : vector<8x256xi32>
    %35 = arith.subi %32, %2 : vector<8x256xi32>
    %36 = math.absi %35 : vector<8x256xi32>
    %c1_i32_16 = arith.constant 1 : i32
    %37 = vector.broadcast %c1_i32_16 : i32 to vector<8x256xi32>
    %38 = arith.cmpi eq, %36, %37 : vector<8x256xi32>
    %39 = arith.andi %34, %38 : vector<8x256xi1>
    %cst_17 = arith.constant 0.000000e+00 : f32
    %cst_18 = arith.constant 0x7F800000 : f32
    %40 = vector.broadcast %cst_17 : f32 to vector<8x256xf32>
    %41 = vector.broadcast %cst_18 : f32 to vector<8x256xf32>
    %42 = arith.select %39, %40, %41 : vector<8x256xi1>, vector<8x256xf32>
    %c1_i32_19 = arith.constant 1 : i32
    %43 = tpu.dynamic_rotate %2 by %c1_i32_19 dim 1 : vector<8x256xi32>, i32 -> vector<8x256xi32>
    %c1_i32_20 = arith.constant 1 : i32
    %44 = tpu.dynamic_rotate %3 by %c1_i32_20 dim 1 : vector<8x256xi32>, i32 -> vector<8x256xi32>
    %45 = arith.cmpi eq, %43, %2 : vector<8x256xi32>
    %46 = arith.subi %44, %3 : vector<8x256xi32>
    %47 = math.absi %46 : vector<8x256xi32>
    %c1_i32_21 = arith.constant 1 : i32
    %48 = vector.broadcast %c1_i32_21 : i32 to vector<8x256xi32>
    %49 = arith.cmpi eq, %47, %48 : vector<8x256xi32>
    %50 = arith.andi %45, %49 : vector<8x256xi1>
    %cst_22 = arith.constant 0.000000e+00 : f32
    %cst_23 = arith.constant 0x7F800000 : f32
    %51 = vector.broadcast %cst_22 : f32 to vector<8x256xf32>
    %52 = vector.broadcast %cst_23 : f32 to vector<8x256xf32>
    %53 = arith.select %50, %51, %52 : vector<8x256xi1>, vector<8x256xf32>
    %c255_i32 = arith.constant 255 : i32
    %54 = tpu.dynamic_rotate %2 by %c255_i32 dim 1 : vector<8x256xi32>, i32 -> vector<8x256xi32>
    %c255_i32_24 = arith.constant 255 : i32
    %55 = tpu.dynamic_rotate %3 by %c255_i32_24 dim 1 : vector<8x256xi32>, i32 -> vector<8x256xi32>
    %56 = arith.cmpi eq, %54, %2 : vector<8x256xi32>
    %57 = arith.subi %55, %3 : vector<8x256xi32>
    %58 = math.absi %57 : vector<8x256xi32>
    %c1_i32_25 = arith.constant 1 : i32
    %59 = vector.broadcast %c1_i32_25 : i32 to vector<8x256xi32>
    %60 = arith.cmpi eq, %58, %59 : vector<8x256xi32>
    %61 = arith.andi %56, %60 : vector<8x256xi1>
    %cst_26 = arith.constant 0.000000e+00 : f32
    %cst_27 = arith.constant 0x7F800000 : f32
    %62 = vector.broadcast %cst_26 : f32 to vector<8x256xf32>
    %63 = vector.broadcast %cst_27 : f32 to vector<8x256xf32>
    %64 = arith.select %61, %62, %63 : vector<8x256xi1>, vector<8x256xf32>
    %c1_i32_28 = arith.constant 1 : i32
    %65 = tpu.dynamic_rotate %1 by %c1_i32_28 dim 0 : vector<8x256xf32>, i32 -> vector<8x256xf32>
    %66 = arith.addf %65, %12 : vector<8x256xf32>
    %67 = arith.minimumf %1, %66 : vector<8x256xf32>
    %c7_i32_29 = arith.constant 7 : i32
    %68 = tpu.dynamic_rotate %1 by %c7_i32_29 dim 0 : vector<8x256xf32>, i32 -> vector<8x256xf32>
    %69 = arith.addf %68, %20 : vector<8x256xf32>
    %70 = arith.minimumf %67, %69 : vector<8x256xf32>
    %c16_i32_30 = arith.constant 16 : i32
    %71 = tpu.dynamic_rotate %1 by %c16_i32_30 dim 1 : vector<8x256xf32>, i32 -> vector<8x256xf32>
    %72 = arith.addf %71, %31 : vector<8x256xf32>
    %73 = arith.minimumf %70, %72 : vector<8x256xf32>
    %c240_i32_31 = arith.constant 240 : i32
    %74 = tpu.dynamic_rotate %1 by %c240_i32_31 dim 1 : vector<8x256xf32>, i32 -> vector<8x256xf32>
    %75 = arith.addf %74, %42 : vector<8x256xf32>
    %76 = arith.minimumf %73, %75 : vector<8x256xf32>
    %c1_i32_32 = arith.constant 1 : i32
    %77 = tpu.dynamic_rotate %1 by %c1_i32_32 dim 1 : vector<8x256xf32>, i32 -> vector<8x256xf32>
    %78 = arith.addf %77, %53 : vector<8x256xf32>
    %79 = arith.minimumf %76, %78 : vector<8x256xf32>
    %c255_i32_33 = arith.constant 255 : i32
    %80 = tpu.dynamic_rotate %1 by %c255_i32_33 dim 1 : vector<8x256xf32>, i32 -> vector<8x256xf32>
    %81 = arith.addf %80, %64 : vector<8x256xf32>
    %82 = arith.minimumf %79, %81 : vector<8x256xf32>
    %c1_i32_34 = arith.constant 1 : i32
    %83 = tpu.dynamic_rotate %82 by %c1_i32_34 dim 0 : vector<8x256xf32>, i32 -> vector<8x256xf32>
    %84 = arith.subf %83, %12 : vector<8x256xf32>
    %85 = arith.maximumf %82, %84 : vector<8x256xf32>
    %c7_i32_35 = arith.constant 7 : i32
    %86 = tpu.dynamic_rotate %82 by %c7_i32_35 dim 0 : vector<8x256xf32>, i32 -> vector<8x256xf32>
    %87 = arith.subf %86, %20 : vector<8x256xf32>
    %88 = arith.maximumf %85, %87 : vector<8x256xf32>
    %c16_i32_36 = arith.constant 16 : i32
    %89 = tpu.dynamic_rotate %88 by %c16_i32_36 dim 1 : vector<8x256xf32>, i32 -> vector<8x256xf32>
    %90 = arith.subf %89, %31 : vector<8x256xf32>
    %91 = arith.maximumf %88, %90 : vector<8x256xf32>
    %c240_i32_37 = arith.constant 240 : i32
    %92 = tpu.dynamic_rotate %88 by %c240_i32_37 dim 1 : vector<8x256xf32>, i32 -> vector<8x256xf32>
    %93 = arith.subf %92, %42 : vector<8x256xf32>
    %94 = arith.maximumf %91, %93 : vector<8x256xf32>
    %c1_i32_38 = arith.constant 1 : i32
    %95 = tpu.dynamic_rotate %94 by %c1_i32_38 dim 1 : vector<8x256xf32>, i32 -> vector<8x256xf32>
    %96 = arith.subf %95, %53 : vector<8x256xf32>
    %97 = arith.maximumf %94, %96 : vector<8x256xf32>
    %c255_i32_39 = arith.constant 255 : i32
    %98 = tpu.dynamic_rotate %94 by %c255_i32_39 dim 1 : vector<8x256xf32>, i32 -> vector<8x256xf32>
    %99 = arith.subf %98, %64 : vector<8x256xf32>
    %100 = arith.maximumf %97, %99 : vector<8x256xf32>
    %101 = arith.subf %1, %100 : vector<8x256xf32>
    %cst_40 = arith.constant 0.000000e+00 : f32
    %102 = vector.broadcast %cst_40 : f32 to vector<8x256xf32>
    %103 = arith.maximumf %101, %102 : vector<8x256xf32>
    %c0_i32 = arith.constant 0 : i32
    %c20_i32 = arith.constant 20 : i32
    %104 = arith.addi %c0_i32, %c20_i32 : i32
    %c1_i32_41 = arith.constant 1 : i32
    %105:2 = scf.for %arg5 = %c0_i32 to %104 step %c1_i32_41 iter_args(%arg6 = %1, %arg7 = %103) -> (vector<8x256xf32>, vector<8x256xf32>)  : i32 {
      %c1_i32_45 = arith.constant 1 : i32
      %109 = tpu.dynamic_rotate %arg6 by %c1_i32_45 dim 0 : vector<8x256xf32>, i32 -> vector<8x256xf32>
      %110 = arith.addf %109, %12 : vector<8x256xf32>
      %111 = arith.minimumf %arg6, %110 : vector<8x256xf32>
      %c7_i32_46 = arith.constant 7 : i32
      %112 = tpu.dynamic_rotate %arg6 by %c7_i32_46 dim 0 : vector<8x256xf32>, i32 -> vector<8x256xf32>
      %113 = arith.addf %112, %20 : vector<8x256xf32>
      %114 = arith.minimumf %111, %113 : vector<8x256xf32>
      %c16_i32_47 = arith.constant 16 : i32
      %115 = tpu.dynamic_rotate %arg6 by %c16_i32_47 dim 1 : vector<8x256xf32>, i32 -> vector<8x256xf32>
      %116 = arith.addf %115, %31 : vector<8x256xf32>
      %117 = arith.minimumf %114, %116 : vector<8x256xf32>
      %c240_i32_48 = arith.constant 240 : i32
      %118 = tpu.dynamic_rotate %arg6 by %c240_i32_48 dim 1 : vector<8x256xf32>, i32 -> vector<8x256xf32>
      %119 = arith.addf %118, %42 : vector<8x256xf32>
      %120 = arith.minimumf %117, %119 : vector<8x256xf32>
      %c1_i32_49 = arith.constant 1 : i32
      %121 = tpu.dynamic_rotate %arg6 by %c1_i32_49 dim 1 : vector<8x256xf32>, i32 -> vector<8x256xf32>
      %122 = arith.addf %121, %53 : vector<8x256xf32>
      %123 = arith.minimumf %120, %122 : vector<8x256xf32>
      %c255_i32_50 = arith.constant 255 : i32
      %124 = tpu.dynamic_rotate %arg6 by %c255_i32_50 dim 1 : vector<8x256xf32>, i32 -> vector<8x256xf32>
      %125 = arith.addf %124, %64 : vector<8x256xf32>
      %126 = arith.minimumf %123, %125 : vector<8x256xf32>
      %c1_i32_51 = arith.constant 1 : i32
      %127 = tpu.dynamic_rotate %126 by %c1_i32_51 dim 0 : vector<8x256xf32>, i32 -> vector<8x256xf32>
      %128 = arith.addf %127, %12 : vector<8x256xf32>
      %129 = arith.minimumf %126, %128 : vector<8x256xf32>
      %c7_i32_52 = arith.constant 7 : i32
      %130 = tpu.dynamic_rotate %126 by %c7_i32_52 dim 0 : vector<8x256xf32>, i32 -> vector<8x256xf32>
      %131 = arith.addf %130, %20 : vector<8x256xf32>
      %132 = arith.minimumf %129, %131 : vector<8x256xf32>
      %c16_i32_53 = arith.constant 16 : i32
      %133 = tpu.dynamic_rotate %126 by %c16_i32_53 dim 1 : vector<8x256xf32>, i32 -> vector<8x256xf32>
      %134 = arith.addf %133, %31 : vector<8x256xf32>
      %135 = arith.minimumf %132, %134 : vector<8x256xf32>
      %c240_i32_54 = arith.constant 240 : i32
      %136 = tpu.dynamic_rotate %126 by %c240_i32_54 dim 1 : vector<8x256xf32>, i32 -> vector<8x256xf32>
      %137 = arith.addf %136, %42 : vector<8x256xf32>
      %138 = arith.minimumf %135, %137 : vector<8x256xf32>
      %c1_i32_55 = arith.constant 1 : i32
      %139 = tpu.dynamic_rotate %126 by %c1_i32_55 dim 1 : vector<8x256xf32>, i32 -> vector<8x256xf32>
      %140 = arith.addf %139, %53 : vector<8x256xf32>
      %141 = arith.minimumf %138, %140 : vector<8x256xf32>
      %c255_i32_56 = arith.constant 255 : i32
      %142 = tpu.dynamic_rotate %126 by %c255_i32_56 dim 1 : vector<8x256xf32>, i32 -> vector<8x256xf32>
      %143 = arith.addf %142, %64 : vector<8x256xf32>
      %144 = arith.minimumf %141, %143 : vector<8x256xf32>
      %c1_i32_57 = arith.constant 1 : i32
      %145 = tpu.dynamic_rotate %144 by %c1_i32_57 dim 0 : vector<8x256xf32>, i32 -> vector<8x256xf32>
      %146 = arith.subf %145, %12 : vector<8x256xf32>
      %147 = arith.maximumf %144, %146 : vector<8x256xf32>
      %c7_i32_58 = arith.constant 7 : i32
      %148 = tpu.dynamic_rotate %144 by %c7_i32_58 dim 0 : vector<8x256xf32>, i32 -> vector<8x256xf32>
      %149 = arith.subf %148, %20 : vector<8x256xf32>
      %150 = arith.maximumf %147, %149 : vector<8x256xf32>
      %c16_i32_59 = arith.constant 16 : i32
      %151 = tpu.dynamic_rotate %150 by %c16_i32_59 dim 1 : vector<8x256xf32>, i32 -> vector<8x256xf32>
      %152 = arith.subf %151, %31 : vector<8x256xf32>
      %153 = arith.maximumf %150, %152 : vector<8x256xf32>
      %c240_i32_60 = arith.constant 240 : i32
      %154 = tpu.dynamic_rotate %150 by %c240_i32_60 dim 1 : vector<8x256xf32>, i32 -> vector<8x256xf32>
      %155 = arith.subf %154, %42 : vector<8x256xf32>
      %156 = arith.maximumf %153, %155 : vector<8x256xf32>
      %c1_i32_61 = arith.constant 1 : i32
      %157 = tpu.dynamic_rotate %156 by %c1_i32_61 dim 1 : vector<8x256xf32>, i32 -> vector<8x256xf32>
      %158 = arith.subf %157, %53 : vector<8x256xf32>
      %159 = arith.maximumf %156, %158 : vector<8x256xf32>
      %c255_i32_62 = arith.constant 255 : i32
      %160 = tpu.dynamic_rotate %156 by %c255_i32_62 dim 1 : vector<8x256xf32>, i32 -> vector<8x256xf32>
      %161 = arith.subf %160, %64 : vector<8x256xf32>
      %162 = arith.maximumf %159, %161 : vector<8x256xf32>
      %163 = arith.subf %126, %162 : vector<8x256xf32>
      %cst_63 = arith.constant 0.000000e+00 : f32
      %164 = vector.broadcast %cst_63 : f32 to vector<8x256xf32>
      %165 = arith.maximumf %163, %164 : vector<8x256xf32>
      %166 = arith.mulf %arg7, %165 : vector<8x256xf32>
      %167 = arith.subf %165, %166 : vector<8x256xf32>
      %cst_64 = arith.constant 0.000000e+00 : f32
      %168 = vector.broadcast %cst_64 : f32 to vector<8x256xf32>
      %169 = arith.maximumf %167, %168 : vector<8x256xf32>
      %170 = arith.addf %arg7, %169 : vector<8x256xf32>
      %c1_i32_65 = arith.constant 1 : i32
      %171 = tpu.dynamic_rotate %126 by %c1_i32_65 dim 0 : vector<8x256xf32>, i32 -> vector<8x256xf32>
      %172 = arith.addf %171, %12 : vector<8x256xf32>
      %173 = arith.minimumf %126, %172 : vector<8x256xf32>
      %c7_i32_66 = arith.constant 7 : i32
      %174 = tpu.dynamic_rotate %126 by %c7_i32_66 dim 0 : vector<8x256xf32>, i32 -> vector<8x256xf32>
      %175 = arith.addf %174, %20 : vector<8x256xf32>
      %176 = arith.minimumf %173, %175 : vector<8x256xf32>
      %c16_i32_67 = arith.constant 16 : i32
      %177 = tpu.dynamic_rotate %126 by %c16_i32_67 dim 1 : vector<8x256xf32>, i32 -> vector<8x256xf32>
      %178 = arith.addf %177, %31 : vector<8x256xf32>
      %179 = arith.minimumf %176, %178 : vector<8x256xf32>
      %c240_i32_68 = arith.constant 240 : i32
      %180 = tpu.dynamic_rotate %126 by %c240_i32_68 dim 1 : vector<8x256xf32>, i32 -> vector<8x256xf32>
      %181 = arith.addf %180, %42 : vector<8x256xf32>
      %182 = arith.minimumf %179, %181 : vector<8x256xf32>
      %c1_i32_69 = arith.constant 1 : i32
      %183 = tpu.dynamic_rotate %126 by %c1_i32_69 dim 1 : vector<8x256xf32>, i32 -> vector<8x256xf32>
      %184 = arith.addf %183, %53 : vector<8x256xf32>
      %185 = arith.minimumf %182, %184 : vector<8x256xf32>
      %c255_i32_70 = arith.constant 255 : i32
      %186 = tpu.dynamic_rotate %126 by %c255_i32_70 dim 1 : vector<8x256xf32>, i32 -> vector<8x256xf32>
      %187 = arith.addf %186, %64 : vector<8x256xf32>
      %188 = arith.minimumf %185, %187 : vector<8x256xf32>
      %c1_i32_71 = arith.constant 1 : i32
      %189 = tpu.dynamic_rotate %188 by %c1_i32_71 dim 0 : vector<8x256xf32>, i32 -> vector<8x256xf32>
      %190 = arith.addf %189, %12 : vector<8x256xf32>
      %191 = arith.minimumf %188, %190 : vector<8x256xf32>
      %c7_i32_72 = arith.constant 7 : i32
      %192 = tpu.dynamic_rotate %188 by %c7_i32_72 dim 0 : vector<8x256xf32>, i32 -> vector<8x256xf32>
      %193 = arith.addf %192, %20 : vector<8x256xf32>
      %194 = arith.minimumf %191, %193 : vector<8x256xf32>
      %c16_i32_73 = arith.constant 16 : i32
      %195 = tpu.dynamic_rotate %188 by %c16_i32_73 dim 1 : vector<8x256xf32>, i32 -> vector<8x256xf32>
      %196 = arith.addf %195, %31 : vector<8x256xf32>
      %197 = arith.minimumf %194, %196 : vector<8x256xf32>
      %c240_i32_74 = arith.constant 240 : i32
      %198 = tpu.dynamic_rotate %188 by %c240_i32_74 dim 1 : vector<8x256xf32>, i32 -> vector<8x256xf32>
      %199 = arith.addf %198, %42 : vector<8x256xf32>
      %200 = arith.minimumf %197, %199 : vector<8x256xf32>
      %c1_i32_75 = arith.constant 1 : i32
      %201 = tpu.dynamic_rotate %188 by %c1_i32_75 dim 1 : vector<8x256xf32>, i32 -> vector<8x256xf32>
      %202 = arith.addf %201, %53 : vector<8x256xf32>
      %203 = arith.minimumf %200, %202 : vector<8x256xf32>
      %c255_i32_76 = arith.constant 255 : i32
      %204 = tpu.dynamic_rotate %188 by %c255_i32_76 dim 1 : vector<8x256xf32>, i32 -> vector<8x256xf32>
      %205 = arith.addf %204, %64 : vector<8x256xf32>
      %206 = arith.minimumf %203, %205 : vector<8x256xf32>
      %c1_i32_77 = arith.constant 1 : i32
      %207 = tpu.dynamic_rotate %206 by %c1_i32_77 dim 0 : vector<8x256xf32>, i32 -> vector<8x256xf32>
      %208 = arith.subf %207, %12 : vector<8x256xf32>
      %209 = arith.maximumf %206, %208 : vector<8x256xf32>
      %c7_i32_78 = arith.constant 7 : i32
      %210 = tpu.dynamic_rotate %206 by %c7_i32_78 dim 0 : vector<8x256xf32>, i32 -> vector<8x256xf32>
      %211 = arith.subf %210, %20 : vector<8x256xf32>
      %212 = arith.maximumf %209, %211 : vector<8x256xf32>
      %c16_i32_79 = arith.constant 16 : i32
      %213 = tpu.dynamic_rotate %212 by %c16_i32_79 dim 1 : vector<8x256xf32>, i32 -> vector<8x256xf32>
      %214 = arith.subf %213, %31 : vector<8x256xf32>
      %215 = arith.maximumf %212, %214 : vector<8x256xf32>
      %c240_i32_80 = arith.constant 240 : i32
      %216 = tpu.dynamic_rotate %212 by %c240_i32_80 dim 1 : vector<8x256xf32>, i32 -> vector<8x256xf32>
      %217 = arith.subf %216, %42 : vector<8x256xf32>
      %218 = arith.maximumf %215, %217 : vector<8x256xf32>
      %c1_i32_81 = arith.constant 1 : i32
      %219 = tpu.dynamic_rotate %218 by %c1_i32_81 dim 1 : vector<8x256xf32>, i32 -> vector<8x256xf32>
      %220 = arith.subf %219, %53 : vector<8x256xf32>
      %221 = arith.maximumf %218, %220 : vector<8x256xf32>
      %c255_i32_82 = arith.constant 255 : i32
      %222 = tpu.dynamic_rotate %218 by %c255_i32_82 dim 1 : vector<8x256xf32>, i32 -> vector<8x256xf32>
      %223 = arith.subf %222, %64 : vector<8x256xf32>
      %224 = arith.maximumf %221, %223 : vector<8x256xf32>
      %225 = arith.subf %188, %224 : vector<8x256xf32>
      %cst_83 = arith.constant 0.000000e+00 : f32
      %226 = vector.broadcast %cst_83 : f32 to vector<8x256xf32>
      %227 = arith.maximumf %225, %226 : vector<8x256xf32>
      %228 = arith.mulf %170, %227 : vector<8x256xf32>
      %229 = arith.subf %227, %228 : vector<8x256xf32>
      %cst_84 = arith.constant 0.000000e+00 : f32
      %230 = vector.broadcast %cst_84 : f32 to vector<8x256xf32>
      %231 = arith.maximumf %229, %230 : vector<8x256xf32>
      %232 = arith.addf %170, %231 : vector<8x256xf32>
      scf.yield %188, %232 : vector<8x256xf32>, vector<8x256xf32>
    }
    %c0_42 = arith.constant 0 : index
    %c0_43 = arith.constant 0 : index
    %c0_44 = arith.constant 0 : index
    %106 = vector.load %arg4[%c0_42, %c0_43, %c0_44] : memref<1x8x256xf32, #tpu.memory_space<vmem>>, vector<1x8x256xf32>
    %107 = vector.shape_cast %106 : vector<1x8x256xf32> to vector<8x256xf32>
    %108 = vector.shape_cast %105#1 : vector<8x256xf32> to vector<1x8x256xf32>
    tpu.vector_store %arg4[%c0_42, %c0_43, %c0_44], %108 {strides = array<i32>} : memref<1x8x256xf32, #tpu.memory_space<vmem>>, vector<1x8x256xf32>,
    return
  }
  func.func @transform_0(%arg0: i32) -> (i32, i32, i32) {
    %c0_i32 = arith.constant 0 : i32
    %c0_i32_0 = arith.constant 0 : i32
    %c0_i32_1 = arith.constant 0 : i32
    return %arg0, %c0_i32, %c0_i32_0 : i32, i32, i32
  }
  func.func @transform_1(%arg0: i32) -> (i32, i32) {
    %c0_i32 = arith.constant 0 : i32
    %c0_i32_0 = arith.constant 0 : i32
    %c0_i32_1 = arith.constant 0 : i32
    return %c0_i32, %c0_i32_0 : i32, i32
  }
  func.func @transform_2(%arg0: i32) -> (i32, i32) {
    %c0_i32 = arith.constant 0 : i32
    %c0_i32_0 = arith.constant 0 : i32
    %c0_i32_1 = arith.constant 0 : i32
    return %c0_i32, %c0_i32_0 : i32, i32
  }
  func.func @transform_3(%arg0: i32) -> (i32, i32, i32) {
    %c0_i32 = arith.constant 0 : i32
    %c0_i32_0 = arith.constant 0 : i32
    %c0_i32_1 = arith.constant 0 : i32
    return %arg0, %c0_i32, %c0_i32_0 : i32, i32, i32
  }
}

</mosaic_0001>

<bundles_post_ra>
// kernel: tpu_custom_call.1
= control target key start
LH: loop header
LB: loop body
LE: loop exit
PB: predicated region body
PF: predicated region fallthrough
CT: control target
= control target key end

     0   :  { %8 = vsyncpa [#allocation3], 0  ;;  %s1890_s0 = inlined_call_operand.hbm [shape: f32[4,8,256], index: 0, kind: input, shape index: {}]   ;;  %s1891_s1 = inlined_call_operand.hbm [shape: s32[8,256], index: 1, kind: input, shape index: {}]   ;;  %s1892_s2 = inlined_call_operand.hbm [shape: s32[8,256], index: 2, kind: input, shape index: {}]   ;;  %s1893_s3 = inlined_call_operand.hbm [shape: f32[4,8,256], index: 3, kind: output, shape index: {}]  }
   0x1   :  { %9 = vsyncpa [#allocation6], 0 }
   0x2   :  { %10 = vsyncpa [#allocation4], 0  ;;  %s1184_s12 = smov 0   ;;  %s1186_s13 = smov 0  }
   0x3   :  { %s1188_s14 = smov 0   ;;  %s1190_s15 = smov 0  }
   0x4 LB: > { %s1151_s16 = smov [#allocation5]   ;;  %s1202_s18 = sadd.s32 4294967295, %s1129_s15   ;;  %s1129_s15 = sphi %s1190_s15, %s1935_s15   ;;  %s1125_s14 = sphi %s1188_s14, %s1934_s14   ;;  %s1121_s13 = sphi %s1186_s13, %s1933_s13   ;;  %s1117_s12 = sphi %s1184_s12, %s1932_s12  }
   0x5   : > { %s142_s17 = sshll.u32 %s1151_s16, 4  ;;  %p818_p0 = scmp.ge.s32.totalorder %s1129_s15, 1  ;;  %s143_s17 = int_to_ptr.vmem [resolvable:$true] %s142_s17 }
   0x6   : > { %p1895_p1 = scmp.eq.s32.totalorder %s1202_s18, 0  ;;  %p115_p2 = scmp.lt.s32.totalorder %s1129_s15, 5 }
   0x7   : > { %s1220_s21 = sadd.s32 1, %s1129_s15   ;;  %s23_s23 = sadd.s32 1, %s1125_s14 }
   0x8   : > { %p1205_p3 = pnand %p818_p0, %p115_p2  ;;  %s20_s22 = ssub.s32 %s1129_s15, %s1220_s21 }
   0x9   : > { %p1224_p6 = scmp.eq.s32.totalorder %s20_s22, 0  ;;  %s953_s27 = scalar_lea.hbm %s1891_s1, 256 }
   0xa   : > { %s1904_s19 = scalar_select %p1205_p3, 1, 0 }
   0xb   : > { %p1894_p4 = pneg %p1205_p3  ;;  %p954_p7 = scmp.ne.s32.totalorder %s1891_s1, %s953_s27 }
   0xc   : > { %s1906_s24 = scalar_select %p1224_p6, 1, 0 }
   0xd   : > { %p1216_p5 = pnand %p1894_p4, %p1895_p1  ;;  %p960_p11 = scmp.lt.u32.totalorder %s953_s27, %s1891_s1 }
   0xf   : > { %s1905_s20 = scalar_select %p1216_p5, 1, 0 }
  0x10   : > { %p1898_p8 = pneg %p1216_p5 }
  0x12   : > { %p956_p9 = pnand %p1898_p8, %p954_p7 }
  0x14   : > { %p957_p10 = pneg %p956_p9 }
  0x16   : > { %p962_p12 = pnand %p960_p11, %p957_p10 }
  0x18   : > { %965 = shalt.err (!%p962_p12)
}
  0x19   : > { %s966_s5 = scalar_lea.vmem %s143_s17, 256  ;;  %p974_p4 = scmp.lt.s32.totalorder %s143_s17, %s143_s17 }
  0x1a   : > { %p967_p13 = scmp.ne.s32.totalorder %s143_s17, %s966_s5  ;;  %p975_p1 = scmp.lt.s32.totalorder %s966_s5, %s966_s5 }
  0x1c   : > { %p969_p0 = pnand %p967_p13, %p1898_p8  ;;  %p976_p3 = por %p975_p1, %p974_p4 }
  0x1e   : > { %p970_p2 = pneg %p969_p0 }
  0x20   : > { %p977_p6 = pnand %p976_p3, %p970_p2 }
  0x22   : > { %980 = shalt.err (!%p977_p6)
}
  0x23   : > { %860 = dma.hbm_to_vmem [thread:$0]  (!%p1216_p5), %s1891_s1, 256, %s143_s17, [#allocation6]  }
  0x24   : > { %p1907_p1 = scmp.ne.s32.totalorder %s1906_s24, 0  ;;  %p36_p3 = scmp.ne.s32.totalorder %s1121_s13, %s1117_s12 }
  0x25   : > { %p101_p4 = scmp.ne.s32.totalorder %s1125_s14, %s1121_s13  ;;  %p102_p6 = scmp.eq.s32.totalorder %s1202_s18, 3 }
  0x26   : > { %s1253_s8 = scalar_select %p1907_p1, %s1125_s14, %s23_s23  }
  0x27   : > { %s840_s9 = sshll.u32 %s1202_s18, 8  ;;  %p1908_p7 = scmp.eq.s32.totalorder %s1202_s18, 0 }
  0x28   : > { %s1272_s16 = scalar_lea.hbm %s1890_s0, %s840_s9  ;;  %p1274_p10 = por %p102_p6, %p101_p4 }
  0x29   : > { %p1263_p9 = por %p1908_p7, %p36_p3  ;;  %s1152_s17 = smov [#allocation2]  }
  0x2a   : > { %s1910_s12 = scalar_select %p1274_p10, 1, 0 }
  0x2b   : > { %s1909_s10 = scalar_select %p1263_p9, 1, 0 }
  0x2c   : > { %s131_s22 = sshll.u32 %s1152_s17, 4  ;;  %p1911_p11 = scmp.ne.s32.totalorder %s1904_s19, 0  ;;  %s132_s22 = int_to_ptr.vmem [resolvable:$true] %s131_s22 }
  0x2d   : > { %s1153_s24 = smov [#allocation7]   ;;  %s981_s26 = scalar_lea.hbm %s1272_s16, 256 }
  0x2e   : > { %p1912_p12 = pneg %p1911_p11  ;;  %s153_s25 = sshll.u32 %s1153_s24, 4  ;;  %s154_s25 = int_to_ptr.vmem [resolvable:$true] %s153_s25 }
  0x2f   : > { %p982_p0 = scmp.ne.s32.totalorder %s1272_s16, %s981_s26  ;;  %s986_s29 = scalar_lea.hbm %s1890_s0, 1024 }
  0x30   : > { %p1283_p13 = pnand %p1912_p12, %p1263_p9  ;;  %p987_p4 = scmp.lt.u32.totalorder %s1272_s16, %s1890_s0 }
  0x31   : > { %p988_p6 = scmp.lt.u32.totalorder %s986_s29, %s981_s26  ;;  %p990_p12 = scmp.lt.u32.totalorder %s981_s26, %s1272_s16 }
  0x32   : > { %p983_p2 = pneg %p1283_p13 }
  0x33   : > { %p989_p7 = por %p988_p6, %p987_p4 }
  0x34   : > { %p984_p1 = pnand %p983_p2, %p982_p0 }
  0x35   : > { %p991_p8 = por %p990_p12, %p989_p7 }
  0x36   : > { %p985_p3 = pneg %p984_p1 }
  0x38   : > { %p992_p10 = pnand %p991_p8, %p985_p3 }
  0x3a   : > { %995 = shalt.err (!%p992_p10)
}
  0x3b   : > { %s996_s5 = scalar_lea.vmem %s132_s22, 256  ;;  %p1004_p11 = scmp.lt.s32.totalorder %s132_s22, %s132_s22 }
  0x3c   : > { %p997_p9 = scmp.ne.s32.totalorder %s132_s22, %s996_s5  ;;  %p1005_p5 = scmp.lt.s32.totalorder %s996_s5, %s996_s5 }
  0x3e   : > { %p999_p0 = pnand %p997_p9, %p983_p2  ;;  %p1006_p4 = por %p1005_p5, %p1004_p11 }
  0x40   : > { %p1000_p1 = pneg %p999_p0 }
  0x42   : > { %p1007_p6 = pnand %p1006_p4, %p1000_p1 }
  0x44   : > { %1010 = shalt.err (!%p1007_p6)
}
  0x45   : > { %857 = dma.hbm_to_vmem [thread:$0]  (!%p1283_p13), %s1272_s16, 256, %s132_s22, [#allocation3]  }
  0x46   : > { %s1011_s11 = scalar_lea.hbm %s1892_s2, 256  ;;  %p1914_p9 = scmp.ne.s32.totalorder %s1905_s20, 0 }
  0x47   : > { %p1012_p8 = scmp.ne.s32.totalorder %s1892_s2, %s1011_s11  ;;  %p1018_p11 = scmp.lt.u32.totalorder %s1011_s11, %s1892_s2 }
  0x48   : > { %p1915_p10 = pneg %p1914_p9 }
  0x4a   : > { %p1014_p2 = pnand %p1012_p8, %p1915_p10 }
  0x4c   : > { %p1015_p5 = pneg %p1014_p2 }
  0x4e   : > { %p1020_p3 = pnand %p1018_p11, %p1015_p5 }
  0x50   : > { %1023 = shalt.err (!%p1020_p3)
}
  0x51   : > { %s1024_s16 = scalar_lea.vmem %s154_s25, 256  ;;  %p1916_p7 = pmov %p1915_p10 }
  0x52   : > { %p1025_p13 = scmp.ne.s32.totalorder %s154_s25, %s1024_s16  ;;  %p1032_p1 = scmp.lt.s32.totalorder %s154_s25, %s154_s25 }
  0x53   : > { %p1033_p4 = scmp.lt.s32.totalorder %s1024_s16, %s1024_s16 }
  0x54   : > { %p1027_p12 = pnand %p1025_p13, %p1916_p7 }
  0x55   : > { %p1034_p6 = por %p1033_p4, %p1032_p1 }
  0x56   : > { %p1028_p0 = pneg %p1027_p12 }
  0x58   : > { %p1035_p8 = pnand %p1034_p6, %p1028_p0 }
  0x5a   : > { %1038 = shalt.err (!%p1035_p8)
}
  0x5b   : > { %863 = dma.hbm_to_vmem [thread:$0]  (!%p1914_p9), %s1892_s2, 256, %s154_s25, [#allocation6]  }
  0x5c   : > { %p1917_p10 = scmp.ne.s32.totalorder %s1904_s19, 0 }
  0x5d   : > { %p1918_p2 = scmp.ne.s32.totalorder (!%p1917_p10), %s1909_s10, 0 }
  0x5e   : > { %166 = sbr.rel (%p1917_p10) target bundleno = 1210 (0x4ba), region = 32 }
  0x65   : > { %1104 = dma.done.wait (%p1918_p2), [#allocation3], 256  }
  0x66   : > { %1106 = vsyncadd (%p1918_p2), [#allocation3], 4294967040  ;;  %p1919_p5 = scmp.eq.s32.totalorder %s1202_s18, 0 }
  0x68   : > { %1108 = dma.done.wait (%p1919_p5), [#allocation6], 512   ;;  %p1920_p11 = pmov %p1919_p5 }
  0x69   : > { %v1338_v0 = vld [vmem:[#allocation5] sm:$0xff]  ;;  %s1154_s20 = smov 112   ;;  %s1155_s19 = smov 16   ;;  %v1344_v1 = vld [vmem:[#allocation5 + $0x8] sm:$0xff]  ;;  %v1350_v2 = vld [vmem:[#allocation7 + $0x8] sm:$0xff]  ;;  %v194_v6 = vlaneseq  ;;  %v1158_v38 = vmov inf  }
  0x6a   : > { %1110 = vsyncadd (%p1920_p11), [#allocation6], 4294966784  ;;  %241 = vrot.lane.b32.xlu1 %v1338_v0, %s1154_s20  ;;  %210 = vrot.lane.b32.xlu0 %v1338_v0, %s1155_s19  ;;  %v1352_v3 = vld [vmem:[#allocation7] sm:$0xff]  ;;  %s1156_s10 = smov 1   ;;  %s1157_s25 = smov 127   ;;  %v1370_v4 = vld [vmem:[#allocation2 + $0x8] sm:$0xff]  }
  0x6b   : > { %v1372_v5 = vld [vmem:[#allocation2] sm:$0xff]   ;;  %v195_v7 = vshrl.u32 %v194_v6, 7  ;;  %v1398_v15 = vand.u32 127, %v194_v6  ;;  %v329_v37 = vrot.slane %v1370_v4, 7  ;;  %v335_v49 = vrot.slane %v1370_v4, 1  ;;  %s1594_s27 = smov 0  }
  0x6c   : > { %v328_v46 = vrot.slane %v1372_v5, 7 }
  0x6d   : > { %v196_v10 = vrot.slane %v195_v7, 7  ;;  %v203_v14 = vrot.slane %v195_v7, 1  ;;  %vm216_vm0 = vcmp.lt.s32.totalorder %v1398_v15, 16  ;;  %vm245_vm1 = vcmp.lt.s32.totalorder %v1398_v15, 112 }
  0x6e   : > { %243 = vrot.lane.b32.xlu1 %v1344_v1, %s1154_s20  ;;  %212 = vrot.lane.b32.xlu0 %v1344_v1, %s1155_s19  ;;  %vm274_vm2 = vcmp.lt.s32.totalorder %v1398_v15, 1  ;;  %vm303_vm4 = vcmp.lt.s32.totalorder %v1398_v15, 127 }
  0x6f   : > { %v197_v13 = vsub.s32 %v196_v10, %v195_v7  ;;  %v204_v19 = vsub.s32 %v203_v14, %v195_v7  ;;  %v334_v7 = vrot.slane %v1372_v5, 1 }
  0x71   : > { %v199_v18 = vsub.s32 0, %v197_v13  ;;  %v206_v23 = vsub.s32 0, %v204_v19 }
  0x72   : > { %279 = vrot.lane.b32.xlu1 %v1350_v2, %s1156_s10  ;;  %277 = vrot.lane.b32.xlu0 %v1352_v3, %s1156_s10 }
  0x73   : > { %v826_v22 = vmin.u32 %v199_v18, %v197_v13  ;;  %v827_v29 = vmin.u32 %v206_v23, %v204_v19 }
  0x75   : > { %vm201_vm3 = vcmp.eq.s32.totalorder %v826_v22, 1  ;;  %vm208_vm5 = vcmp.eq.s32.totalorder %v827_v29, 1 }
  0x76   : > { %221 = vrot.lane.b32.xlu1 %v1350_v2, %s1155_s19  ;;  %219 = vrot.lane.b32.xlu0 %v1352_v3, %s1155_s19  ;;  %v1420_v39 = vsel %vm201_vm3, 0.0, %v1158_v38  ;;  %v1436_v54 = vsel %vm208_vm5, 0.0, %v1158_v38 }
  0x77   : > { %v331_v48 = vadd.f32 %v329_v37, %v1420_v39  ;;  %v330_v62 = vadd.f32 %v328_v46, %v1420_v39 }
  0x7a   : > { %308 = vrot.lane.b32.xlu1 %v1350_v2, %s1157_s25  ;;  %306 = vrot.lane.b32.xlu0 %v1352_v3, %s1157_s25 }
  0x7e   : > { %250 = vrot.lane.b32.xlu1 %v1350_v2, %s1154_s20  ;;  %248 = vrot.lane.b32.xlu0 %v1352_v3, %s1154_s20 }
  0x82   : > { %342 = vrot.lane.b32.xlu1 %v1370_v4, %s1155_s19  ;;  %340 = vrot.lane.b32.xlu0 %v1372_v5, %s1155_s19 }
  0x86   : > { %272 = vrot.lane.b32.xlu1 %v1344_v1, %s1156_s10  ;;  %270 = vrot.lane.b32.xlu0 %v1338_v0, %s1156_s10 }
  0x8a   : > { %352 = vrot.lane.b32.xlu1 %v1370_v4, %s1154_s20  ;;  %350 = vrot.lane.b32.xlu0 %v1372_v5, %s1154_s20 }
  0x8e   : > { %301 = vrot.lane.b32.xlu1 %v1344_v1, %s1157_s25  ;;  %299 = vrot.lane.b32.xlu0 %v1338_v0, %s1157_s25 }
  0x92   : > { %362 = vrot.lane.b32.xlu1 %v1370_v4, %s1156_s10  ;;  %360 = vrot.lane.b32.xlu0 %v1372_v5, %s1156_s10 }
  0x96   : > { %372 = vrot.lane.b32.xlu1 %v1370_v4, %s1157_s25  ;;  %370 = vrot.lane.b32.xlu0 %v1372_v5, %s1157_s25 }
  0xdc   : > { %v242_v8 = vpop.permute.xlu1 %241  ;;  %v211_v9 = vpop.permute.xlu0 %210 }
  0xe0   : > { %v244_v11 = vpop.permute.xlu1 %243  ;;  %v213_v12 = vpop.permute.xlu0 %212 }
  0xe1   : > { %v218_v24 = vsel %vm216_vm0, %v213_v12, %v211_v9  ;;  %v217_v25 = vsel %vm216_vm0, %v211_v9, %v213_v12  ;;  %v246_v30 = vsel %vm245_vm1, %v242_v8, %v244_v11  ;;  %v247_v31 = vsel %vm245_vm1, %v244_v11, %v242_v8 }
  0xe2   : > { %v227_v28 = vsub.s32 %v218_v24, %v1338_v0  ;;  %v228_v32 = vsub.s32 %v217_v25, %v1344_v1  ;;  %v256_v40 = vsub.s32 %v246_v30, %v1338_v0  ;;  %v257_v41 = vsub.s32 %v247_v31, %v1344_v1 }
  0xe3   : > { %v333_v11 = vmin.f32 %v1370_v4, %v331_v48  ;;  %v337_v12 = vadd.f32 %v335_v49, %v1436_v54 }
  0xe4   : > { %v280_v16 = vpop.permute.xlu1 %279  ;;  %v278_v17 = vpop.permute.xlu0 %277  ;;  %v230_v42 = vsub.s32 0, %v227_v28  ;;  %v233_v43 = vsub.s32 0, %v228_v32  ;;  %v259_v55 = vsub.s32 0, %v256_v40  ;;  %v262_v56 = vsub.s32 0, %v257_v41 }
  0xe5   : > { %v281_v33 = vsel %vm274_vm2, %v278_v17, %v280_v16  ;;  %v282_v34 = vsel %vm274_vm2, %v280_v16, %v278_v17 }
  0xe6   : > { %v285_v44 = vsub.s32 %v282_v34, %v1352_v3  ;;  %v286_v45 = vsub.s32 %v281_v33, %v1350_v2  ;;  %v828_v57 = vmin.u32 %v230_v42, %v227_v28  ;;  %v829_v59 = vmin.u32 %v233_v43, %v228_v32 }
  0xe7   : > { %v830_v13 = vmin.u32 %v259_v55, %v256_v40  ;;  %v831_v14 = vmin.u32 %v262_v56, %v257_v41  ;;  %v336_v28 = vadd.f32 %v334_v7, %v1436_v54 }
  0xe8   : > { %v222_v20 = vpop.permute.xlu1 %221  ;;  %v220_v21 = vpop.permute.xlu0 %219  ;;  %v288_v60 = vsub.s32 0, %v285_v44  ;;  %v291_v61 = vsub.s32 0, %v286_v45  ;;  %vm235_vm8 = vcmp.eq.s32.totalorder %v828_v57, 1  ;;  %vm236_vm9 = vcmp.eq.s32.totalorder %v829_v59, 1 }
  0xe9   : > { %v224_v51 = vsel %vm216_vm0, %v222_v20, %v220_v21  ;;  %v223_v58 = vsel %vm216_vm0, %v220_v21, %v222_v20  ;;  %vm264_vm14 = vcmp.eq.s32.totalorder %v830_v13, 1  ;;  %vm265_vm15 = vcmp.eq.s32.totalorder %v831_v14, 1 }
  0xea   : > { %vm225_vm6 = vcmp.eq.s32.totalorder %v224_v51, %v1352_v3  ;;  %vm226_vm7 = vcmp.eq.s32.totalorder %v223_v58, %v1350_v2  ;;  %v832_v17 = vmin.u32 %v288_v60, %v285_v44  ;;  %v833_v18 = vmin.u32 %v291_v61, %v286_v45 }
  0xeb   : > { %vm237_vm10 = vmand %vm225_vm6, %vm235_vm8 }
  0xec   : > { %v309_v26 = vpop.permute.xlu1 %308  ;;  %v307_v27 = vpop.permute.xlu0 %306  ;;  %vm1456_vm11 = vmand %vm226_vm7, %vm236_vm9  ;;  %v1467_v29 = vsel %vm237_vm10, 0.0, %v1158_v38  ;;  %vm293_vm8 = vcmp.eq.s32.totalorder %v832_v17, 1  ;;  %vm294_vm9 = vcmp.eq.s32.totalorder %v833_v18, 1 }
  0xed   : > { %v310_v52 = vsel %vm303_vm4, %v307_v27, %v309_v26  ;;  %v311_v53 = vsel %vm303_vm4, %v309_v26, %v307_v27  ;;  %v339_v26 = vmin.f32 %v333_v11, %v337_v12  ;;  %v332_v27 = vmin.f32 %v1372_v5, %v330_v62 }
  0xee   : > { %v314_v63 = vsub.s32 %v310_v52, %v1352_v3  ;;  %v315_v6 = vsub.s32 %v311_v53, %v1350_v2  ;;  %v1477_v30 = vsel %vm1456_vm11, 0.0, %v1158_v38 }
  0xef   : > { %v338_v44 = vmin.f32 %v332_v27, %v336_v28 }
  0xf0   : > { %v251_v35 = vpop.permute.xlu1 %250  ;;  %v249_v36 = vpop.permute.xlu0 %248  ;;  %v317_v21 = vsub.s32 0, %v314_v63  ;;  %v320_v22 = vsub.s32 0, %v315_v6 }
  0xf1   : > { %v252_v10 = vsel %vm245_vm1, %v249_v36, %v251_v35  ;;  %v253_v16 = vsel %vm245_vm1, %v251_v35, %v249_v36 }
  0xf2   : > { %vm254_vm12 = vcmp.eq.s32.totalorder %v252_v10, %v1352_v3  ;;  %vm255_vm13 = vcmp.eq.s32.totalorder %v253_v16, %v1350_v2  ;;  %v834_v33 = vmin.u32 %v317_v21, %v314_v63  ;;  %v835_v34 = vmin.u32 %v320_v22, %v315_v6 }
  0xf3   : > { %vm1470_vm5 = vmand %vm254_vm12, %vm264_vm14 }
  0xf4   : > { %v343_v47 = vpop.permute.xlu1 %342  ;;  %v341_v50 = vpop.permute.xlu0 %340  ;;  %vm1486_vm7 = vmand %vm255_vm13, %vm265_vm15  ;;  %vm322_vm14 = vcmp.eq.s32.totalorder %v834_v33, 1  ;;  %vm323_vm15 = vcmp.eq.s32.totalorder %v835_v34, 1 }
  0xf5   : > { %v344_v31 = vsel %vm216_vm0, %v341_v50, %v343_v47  ;;  %v345_v32 = vsel %vm216_vm0, %v343_v47, %v341_v50  ;;  %v1510_v47 = vsel %vm1470_vm5, 0.0, %v1158_v38  ;;  %v1515_v48 = vsel %vm1486_vm7, 0.0, %v1158_v38 }
  0xf6   : > { %v346_v45 = vadd.f32 %v345_v32, %v1467_v29  ;;  %v347_v46 = vadd.f32 %v344_v31, %v1477_v30 }
  0xf8   : > { %v273_v8 = vpop.permute.xlu1 %272  ;;  %v271_v9 = vpop.permute.xlu0 %270  ;;  %v348_v56 = vmin.f32 %v338_v44, %v346_v45  ;;  %v349_v57 = vmin.f32 %v339_v26, %v347_v46 }
  0xf9   : > { %v276_v19 = vsel %vm274_vm2, %v273_v8, %v271_v9  ;;  %v275_v23 = vsel %vm274_vm2, %v271_v9, %v273_v8 }
  0xfa   : > { %vm283_vm3 = vcmp.eq.s32.totalorder %v276_v19, %v1338_v0  ;;  %vm284_vm6 = vcmp.eq.s32.totalorder %v275_v23, %v1344_v1 }
  0xfb   : > { %vm1490_vm10 = vmand %vm283_vm3, %vm293_vm8 }
  0xfc   : > { %v353_v24 = vpop.permute.xlu1 %352  ;;  %v351_v25 = vpop.permute.xlu0 %350  ;;  %vm296_vm11 = vmand %vm284_vm6, %vm294_vm9  ;;  %v1523_v52 = vsel %vm1490_vm10, 0.0, %v1158_v38 }
  0xfd   : > { %v354_v41 = vsel %vm245_vm1, %v351_v25, %v353_v24  ;;  %v355_v42 = vsel %vm245_vm1, %v353_v24, %v351_v25  ;;  %v1526_v53 = vsel %vm296_vm11, 0.0, %v1158_v38 }
  0xfe   : > { %v356_v49 = vadd.f32 %v354_v41, %v1510_v47  ;;  %v357_v50 = vadd.f32 %v355_v42, %v1515_v48 }
 0x100   : > { %v302_v36 = vpop.permute.xlu1 %301  ;;  %v300_v37 = vpop.permute.xlu0 %299  ;;  %v358_v60 = vmin.f32 %v348_v56, %v356_v49  ;;  %v359_v61 = vmin.f32 %v349_v57, %v357_v50 }
 0x101   : > { %v304_v2 = vsel %vm303_vm4, %v300_v37, %v302_v36  ;;  %v305_v43 = vsel %vm303_vm4, %v302_v36, %v300_v37 }
 0x102   : > { %vm312_vm12 = vcmp.eq.s32.totalorder %v304_v2, %v1338_v0  ;;  %vm313_vm13 = vcmp.eq.s32.totalorder %v305_v43, %v1344_v1 }
 0x103   : > { %vm324_vm3 = vmand %vm312_vm12, %vm322_vm14 }
 0x104   : > { %v363_v51 = vpop.permute.xlu1 %362  ;;  %v361_v0 = vpop.permute.xlu0 %360  ;;  %vm325_vm5 = vmand %vm313_vm13, %vm323_vm15  ;;  %v1535_v6 = vsel %vm324_vm3, 0.0, %v1158_v38 }
 0x105   : > { %v364_v1 = vsel %vm274_vm2, %v361_v0, %v363_v51  ;;  %v365_v55 = vsel %vm274_vm2, %v363_v51, %v361_v0  ;;  %v1538_v7 = vsel %vm325_vm5, 0.0, %v1158_v38 }
 0x106   : > { %v366_v58 = vadd.f32 %v365_v55, %v1523_v52  ;;  %v367_v59 = vadd.f32 %v364_v1, %v1526_v53 }
 0x108   : > { %v373_v62 = vpop.permute.xlu1 %372  ;;  %v371_v63 = vpop.permute.xlu0 %370  ;;  %v368_v10 = vmin.f32 %v358_v60, %v366_v58  ;;  %v369_v11 = vmin.f32 %v359_v61, %v367_v59 }
 0x109   : > { %v374_v8 = vsel %vm303_vm4, %v371_v63, %v373_v62  ;;  %v375_v9 = vsel %vm303_vm4, %v373_v62, %v371_v63 }
 0x10a   : > { %v376_v12 = vadd.f32 %v374_v8, %v1535_v6  ;;  %v377_v13 = vadd.f32 %v375_v9, %v1538_v7 }
 0x10c   : > { %v378_v14 = vmin.f32 %v368_v10, %v376_v12  ;;  %v379_v16 = vmin.f32 %v369_v11, %v377_v13 }
 0x10e   : > { %v380_v17 = vrot.slane %v378_v14, 7  ;;  %v381_v18 = vrot.slane %v379_v16, 7  ;;  %v387_v19 = vrot.slane %v379_v16, 1  ;;  %v386_v20 = vrot.slane %v378_v14, 1 }
 0x110   : > { %v383_v38 = vsub.f32 %v381_v18, %v1420_v39  ;;  %v382_v21 = vsub.f32 %v380_v17, %v1420_v39  ;;  %v389_v23 = vsub.f32 %v387_v19, %v1436_v54  ;;  %v388_v25 = vsub.f32 %v386_v20, %v1436_v54 }
 0x112   : > { %v385_v22 = vmax.f32 %v379_v16, %v383_v38  ;;  %v384_v24 = vmax.f32 %v378_v14, %v382_v21 }
 0x114   : > { %v391_v26 = vmax.f32 %v385_v22, %v389_v23  ;;  %v390_v27 = vmax.f32 %v384_v24, %v388_v25 }
 0x116   : > { %394 = vrot.lane.b32.xlu1 %v391_v26, %s1155_s19  ;;  %392 = vrot.lane.b32.xlu0 %v390_v27, %s1155_s19 }
 0x11a   : > { %404 = vrot.lane.b32.xlu1 %v391_v26, %s1154_s20  ;;  %402 = vrot.lane.b32.xlu0 %v390_v27, %s1154_s20 }
 0x188   : > { %v395_v28 = vpop.permute.xlu1 %394  ;;  %v393_v3 = vpop.permute.xlu0 %392 }
 0x189   : > { %v396_v31 = vsel %vm216_vm0, %v393_v3, %v395_v28  ;;  %v397_v32 = vsel %vm216_vm0, %v395_v28, %v393_v3 }
 0x18a   : > { %v398_v33 = vsub.f32 %v397_v32, %v1467_v29  ;;  %v399_v34 = vsub.f32 %v396_v31, %v1477_v30 }
 0x18c   : > { %v405_v35 = vpop.permute.xlu1 %404  ;;  %v403_v36 = vpop.permute.xlu0 %402  ;;  %v400_v41 = vmax.f32 %v390_v27, %v398_v33  ;;  %v401_v42 = vmax.f32 %v391_v26, %v399_v34 }
 0x18d   : > { %v406_v37 = vsel %vm245_vm1, %v403_v36, %v405_v35  ;;  %v407_v40 = vsel %vm245_vm1, %v405_v35, %v403_v36 }
 0x18e   : > { %v408_v2 = vsub.f32 %v406_v37, %v1510_v47  ;;  %v409_v43 = vsub.f32 %v407_v40, %v1515_v48 }
 0x190   : > { %v411_v44 = vmax.f32 %v401_v42, %v409_v43  ;;  %v410_v45 = vmax.f32 %v400_v41, %v408_v2 }
 0x192   : > { %414 = vrot.lane.b32.xlu1 %v411_v44, %s1156_s10  ;;  %412 = vrot.lane.b32.xlu0 %v410_v45, %s1156_s10 }
 0x196   : > { %424 = vrot.lane.b32.xlu1 %v411_v44, %s1157_s25  ;;  %422 = vrot.lane.b32.xlu0 %v410_v45, %s1157_s25 }
 0x204   : > { %v415_v46 = vpop.permute.xlu1 %414  ;;  %v413_v49 = vpop.permute.xlu0 %412 }
 0x205   : > { %v416_v50 = vsel %vm274_vm2, %v413_v49, %v415_v46  ;;  %v417_v51 = vsel %vm274_vm2, %v415_v46, %v413_v49 }
 0x206   : > { %v418_v0 = vsub.f32 %v417_v51, %v1523_v52  ;;  %v419_v1 = vsub.f32 %v416_v50, %v1526_v53 }
 0x208   : > { %v425_v55 = vpop.permute.xlu1 %424  ;;  %v423_v56 = vpop.permute.xlu0 %422  ;;  %v420_v59 = vmax.f32 %v410_v45, %v418_v0  ;;  %v421_v60 = vmax.f32 %v411_v44, %v419_v1 }
 0x209   : > { %v426_v57 = vsel %vm303_vm4, %v423_v56, %v425_v55  ;;  %v427_v58 = vsel %vm303_vm4, %v425_v55, %v423_v56 }
 0x20a   : > { %v428_v61 = vsub.f32 %v426_v57, %v1535_v6  ;;  %v429_v62 = vsub.f32 %v427_v58, %v1538_v7 }
 0x20c   : > { %v430_v63 = vmax.f32 %v420_v59, %v428_v61  ;;  %v431_v8 = vmax.f32 %v421_v60, %v429_v62 }
 0x20e   : > { %v432_v9 = vsub.f32 %v1372_v5, %v430_v63  ;;  %v433_v10 = vsub.f32 %v1370_v4, %v431_v8 }
 0x210   : > { %v434_v11 = vmax.f32 %v432_v9, 0.0   ;;  %v435_v12 = vmax.f32 %v433_v10, 0.0  }
 0x211 LB: >> { %s1159_s28 = smov 112   ;;  %s1160_s29 = smov 16   ;;  %v446_v13 = vrot.slane %v1145_v5, 7  ;;  %v447_v14 = vrot.slane %v1141_v4, 7  ;;  %v452_v17 = vrot.slane %v1145_v5, 1  ;;  %v453_v19 = vrot.slane %v1141_v4, 1  ;;  %s1149_s27 = sphi %s1594_s27, %s441_s27   ;;  %v1145_v5 = vphi %v1372_v5, %v1697_v5   ;;  %v1141_v4 = vphi %v1370_v4, %v1699_v4   ;;  %v1137_v11 = vphi %v434_v11, %v1930_v11   ;;  %v1133_v12 = vphi %v435_v12, %v1929_v12  }
 0x212   : >> { %468 = vrot.lane.b32.xlu1 %v1145_v5, %s1159_s28  ;;  %458 = vrot.lane.b32.xlu0 %v1145_v5, %s1160_s29  ;;  %s1161_s30 = smov 1   ;;  %s1162_s4 = smov 127  }
 0x213   : >> { %v448_v16 = vadd.f32 %v446_v13, %v1420_v39  ;;  %v449_v18 = vadd.f32 %v447_v14, %v1420_v39  ;;  %v454_v22 = vadd.f32 %v452_v17, %v1436_v54  ;;  %v455_v24 = vadd.f32 %v453_v19, %v1436_v54  ;;  %s441_s27 = sadd.s32 1, %s1149_s27  }
 0x214   : >> { %p438_p9 = scmp.ge.s32.totalorder %s441_s27, 20  }
 0x215   : >> { %v450_v21 = vmin.f32 %v1145_v5, %v448_v16  ;;  %v451_v23 = vmin.f32 %v1141_v4, %v449_v18  ;;  %s736_s7 = scalar_lea.hbm (%p438_p9), %s1893_s3, %s840_s9  ;;  %s1163_s11 = smov (%p438_p9), [#allocation8]  }
 0x216   : >> { %470 = vrot.lane.b32.xlu1 %v1141_v4, %s1159_s28  ;;  %460 = vrot.lane.b32.xlu0 %v1141_v4, %s1160_s29  ;;  %s738_s15 = sshll.u32 (%p438_p9), %s1163_s11, 4  ;;  %p1931_p13 = scmp.ne.s32.totalorder (%p438_p9), %s1910_s12, 0  ;;  %s739_s15 = int_to_ptr.vmem [resolvable:$true] %s738_s15 }
 0x217   : >> { %v456_v26 = vmin.f32 %v450_v21, %v454_v22  ;;  %v457_v28 = vmin.f32 %v451_v23, %v455_v24  ;;  %s1039_s17 = scalar_lea.vmem (%p438_p9), %s739_s15, 256  ;;  %p1046_p0 = scmp.lt.s32.totalorder (%p438_p9), %s739_s15, %s739_s15 }
 0x218   : > { %p1040_p3 = scmp.ne.s32.totalorder (%p438_p9), %s739_s15, %s1039_s17  ;;  %p1047_p1 = scmp.lt.s32.totalorder (%p438_p9), %s1039_s17, %s1039_s17 }
 0x21a   : >> { %480 = vrot.lane.b32.xlu1 %v1141_v4, %s1161_s30  ;;  %478 = vrot.lane.b32.xlu0 %v1145_v5, %s1161_s30  ;;  %p1041_p7 = pnand (%p438_p9), %p1040_p3, %p1931_p13  ;;  %p1048_p4 = por (%p438_p9), %p1047_p1, %p1046_p0 }
 0x21c   : > { %p1042_p12 = pneg (%p438_p9), %p1041_p7 }
 0x21e   : >> { %490 = vrot.lane.b32.xlu1 %v1141_v4, %s1162_s4  ;;  %488 = vrot.lane.b32.xlu0 %v1145_v5, %s1162_s4  ;;  %p1049_p6 = pnand (%p438_p9), %p1048_p4, %p1042_p12 }
 0x284   : >> { %v469_v20 = vpop.permute.xlu1 %468  ;;  %v459_v38 = vpop.permute.xlu0 %458 }
 0x288   : >> { %v471_v25 = vpop.permute.xlu1 %470  ;;  %v461_v27 = vpop.permute.xlu0 %460 }
 0x289   : >> { %v472_v3 = vsel %vm245_vm1, %v469_v20, %v471_v25  ;;  %v473_v31 = vsel %vm245_vm1, %v471_v25, %v469_v20  ;;  %v462_v32 = vsel %vm216_vm0, %v459_v38, %v461_v27  ;;  %v463_v5 = vsel %vm216_vm0, %v461_v27, %v459_v38 }
 0x28a   : >> { %v464_v4 = vadd.f32 %v463_v5, %v1467_v29  ;;  %v465_v33 = vadd.f32 %v462_v32, %v1477_v30  ;;  %v474_v34 = vadd.f32 %v472_v3, %v1510_v47  ;;  %v475_v35 = vadd.f32 %v473_v31, %v1515_v48 }
 0x28c   : >> { %v466_v36 = vmin.f32 %v456_v26, %v464_v4  ;;  %v467_v37 = vmin.f32 %v457_v28, %v465_v33  ;;  %v481_v40 = vpop.permute.xlu1 %480  ;;  %v479_v41 = vpop.permute.xlu0 %478 }
 0x28d   : >> { %v482_v42 = vsel %vm274_vm2, %v479_v41, %v481_v40  ;;  %v483_v2 = vsel %vm274_vm2, %v481_v40, %v479_v41 }
 0x28e   : >> { %v476_v43 = vmin.f32 %v466_v36, %v474_v34  ;;  %v477_v44 = vmin.f32 %v467_v37, %v475_v35  ;;  %v484_v45 = vadd.f32 %v483_v2, %v1523_v52  ;;  %v485_v46 = vadd.f32 %v482_v42, %v1526_v53 }
 0x290   : >> { %v491_v49 = vpop.permute.xlu1 %490  ;;  %v489_v50 = vpop.permute.xlu0 %488  ;;  %v486_v1 = vmin.f32 %v476_v43, %v484_v45  ;;  %v487_v55 = vmin.f32 %v477_v44, %v485_v46 }
 0x291   : >> { %v492_v51 = vsel %vm303_vm4, %v489_v50, %v491_v49  ;;  %v493_v0 = vsel %vm303_vm4, %v491_v49, %v489_v50 }
 0x292   : >> { %v494_v56 = vadd.f32 %v492_v51, %v1535_v6  ;;  %v495_v57 = vadd.f32 %v493_v0, %v1538_v7 }
 0x294   : >> { %v1643_v58 = vmin.f32 %v486_v1, %v494_v56  ;;  %v1645_v59 = vmin.f32 %v487_v55, %v495_v57 }
 0x296   : >> { %510 = vrot.lane.b32.xlu0 %v1643_v58, %s1160_s29  ;;  %512 = vrot.lane.b32.xlu1 %v1645_v59, %s1160_s29  ;;  %v498_v60 = vrot.slane %v1643_v58, 7  ;;  %v499_v61 = vrot.slane %v1645_v59, 7  ;;  %v504_v10 = vrot.slane %v1643_v58, 1  ;;  %v505_v13 = vrot.slane %v1645_v59, 1 }
 0x298   : >> { %v500_v63 = vadd.f32 %v498_v60, %v1420_v39  ;;  %v501_v9 = vadd.f32 %v499_v61, %v1420_v39  ;;  %v506_v22 = vadd.f32 %v504_v10, %v1436_v54  ;;  %v507_v23 = vadd.f32 %v505_v13, %v1436_v54 }
 0x29a   : >> { %520 = vrot.lane.b32.xlu0 %v1643_v58, %s1159_s28  ;;  %522 = vrot.lane.b32.xlu1 %v1645_v59, %s1159_s28  ;;  %v502_v17 = vmin.f32 %v1643_v58, %v500_v63  ;;  %v503_v18 = vmin.f32 %v1645_v59, %v501_v9 }
 0x29c   : >> { %v508_v26 = vmin.f32 %v502_v17, %v506_v22  ;;  %v509_v27 = vmin.f32 %v503_v18, %v507_v23 }
 0x29e   : >> { %530 = vrot.lane.b32.xlu0 %v1643_v58, %s1161_s30  ;;  %532 = vrot.lane.b32.xlu1 %v1645_v59, %s1161_s30 }
 0x2a2   : >> { %540 = vrot.lane.b32.xlu0 %v1643_v58, %s1162_s4  ;;  %542 = vrot.lane.b32.xlu1 %v1645_v59, %s1162_s4 }
 0x308   : >> { %v511_v62 = vpop.permute.xlu0 %510  ;;  %v513_v8 = vpop.permute.xlu1 %512 }
 0x309   : >> { %v514_v14 = vsel %vm216_vm0, %v511_v62, %v513_v8  ;;  %v515_v16 = vsel %vm216_vm0, %v513_v8, %v511_v62 }
 0x30a   : >> { %v516_v24 = vadd.f32 %v515_v16, %v1467_v29  ;;  %v517_v25 = vadd.f32 %v514_v14, %v1477_v30 }
 0x30c   : >> { %v521_v19 = vpop.permute.xlu0 %520  ;;  %v523_v20 = vpop.permute.xlu1 %522  ;;  %v518_v33 = vmin.f32 %v508_v26, %v516_v24  ;;  %v519_v34 = vmin.f32 %v509_v27, %v517_v25 }
 0x30d   : >> { %v524_v38 = vsel %vm245_vm1, %v521_v19, %v523_v20  ;;  %v525_v21 = vsel %vm245_vm1, %v523_v20, %v521_v19 }
 0x30e   : >> { %v526_v28 = vadd.f32 %v524_v38, %v1510_v47  ;;  %v527_v3 = vadd.f32 %v525_v21, %v1515_v48 }
 0x310   : >> { %v531_v31 = vpop.permute.xlu0 %530  ;;  %v533_v32 = vpop.permute.xlu1 %532  ;;  %v528_v37 = vmin.f32 %v518_v33, %v526_v28  ;;  %v529_v40 = vmin.f32 %v519_v34, %v527_v3 }
 0x311   : >> { %v534_v5 = vsel %vm274_vm2, %v531_v31, %v533_v32  ;;  %v535_v4 = vsel %vm274_vm2, %v533_v32, %v531_v31 }
 0x312   : >> { %v536_v35 = vadd.f32 %v535_v4, %v1523_v52  ;;  %v537_v36 = vadd.f32 %v534_v5, %v1526_v53 }
 0x314   : >> { %v541_v41 = vpop.permute.xlu0 %540  ;;  %v543_v42 = vpop.permute.xlu1 %542  ;;  %v538_v44 = vmin.f32 %v528_v37, %v536_v35  ;;  %v539_v45 = vmin.f32 %v529_v40, %v537_v36 }
 0x315   : >> { %v544_v2 = vsel %vm303_vm4, %v541_v41, %v543_v42  ;;  %v545_v43 = vsel %vm303_vm4, %v543_v42, %v541_v41 }
 0x316   : >> { %v546_v46 = vadd.f32 %v544_v2, %v1535_v6  ;;  %v547_v49 = vadd.f32 %v545_v43, %v1538_v7 }
 0x318   : >> { %v1697_v5 = vmin.f32 %v538_v44, %v546_v46   ;;  %v1699_v4 = vmin.f32 %v539_v45, %v547_v49  }
 0x31a   : >> { %622 = vrot.lane.b32.xlu0 %v1697_v5, %s1160_s29  ;;  %624 = vrot.lane.b32.xlu1 %v1699_v4, %s1160_s29  ;;  %v550_v50 = vrot.slane %v1697_v5, 7  ;;  %v551_v51 = vrot.slane %v1699_v4, 7  ;;  %v556_v0 = vrot.slane %v1697_v5, 1  ;;  %v557_v1 = vrot.slane %v1699_v4, 1 }
 0x31c   : >> { %v614_v55 = vadd.f32 %v550_v50, %v1420_v39  ;;  %v615_v56 = vadd.f32 %v551_v51, %v1420_v39  ;;  %v618_v60 = vadd.f32 %v556_v0, %v1436_v54  ;;  %v619_v62 = vadd.f32 %v557_v1, %v1436_v54 }
 0x31d   : >> { %v552_v63 = vsub.f32 %v550_v50, %v1420_v39  ;;  %v553_v8 = vsub.f32 %v551_v51, %v1420_v39  ;;  %v558_v16 = vsub.f32 %v556_v0, %v1436_v54  ;;  %v559_v17 = vsub.f32 %v557_v1, %v1436_v54 }
 0x31e   : >> { %632 = vrot.lane.b32.xlu0 %v1697_v5, %s1159_s28  ;;  %634 = vrot.lane.b32.xlu1 %v1699_v4, %s1159_s28  ;;  %v616_v57 = vmin.f32 %v1697_v5, %v614_v55  ;;  %v617_v61 = vmin.f32 %v1699_v4, %v615_v56 }
 0x31f   : >> { %v554_v13 = vmax.f32 %v1697_v5, %v552_v63  ;;  %v555_v14 = vmax.f32 %v1699_v4, %v553_v8 }
 0x320   : >> { %v620_v9 = vmin.f32 %v616_v57, %v618_v60  ;;  %v621_v10 = vmin.f32 %v617_v61, %v619_v62 }
 0x321   : >> { %v1733_v18 = vmax.f32 %v554_v13, %v558_v16  ;;  %v1735_v19 = vmax.f32 %v555_v14, %v559_v17 }
 0x322   : >> { %642 = vrot.lane.b32.xlu0 %v1697_v5, %s1161_s30  ;;  %644 = vrot.lane.b32.xlu1 %v1699_v4, %s1161_s30 }
 0x326   : >> { %652 = vrot.lane.b32.xlu0 %v1697_v5, %s1162_s4  ;;  %654 = vrot.lane.b32.xlu1 %v1699_v4, %s1162_s4 }
 0x32a   : >> { %562 = vrot.lane.b32.xlu0 %v1733_v18, %s1160_s29  ;;  %564 = vrot.lane.b32.xlu1 %v1735_v19, %s1160_s29 }
 0x32e   : >> { %572 = vrot.lane.b32.xlu0 %v1733_v18, %s1159_s28  ;;  %574 = vrot.lane.b32.xlu1 %v1735_v19, %s1159_s28 }
 0x38c   : >> { %v623_v20 = vpop.permute.xlu0 %622  ;;  %v625_v38 = vpop.permute.xlu1 %624 }
 0x38d   : >> { %v626_v21 = vsel %vm216_vm0, %v623_v20, %v625_v38  ;;  %v627_v22 = vsel %vm216_vm0, %v625_v38, %v623_v20 }
 0x38e   : >> { %v628_v27 = vadd.f32 %v627_v22, %v1467_v29  ;;  %v629_v28 = vadd.f32 %v626_v21, %v1477_v30 }
 0x390   : >> { %v633_v23 = vpop.permute.xlu0 %632  ;;  %v635_v24 = vpop.permute.xlu1 %634  ;;  %v630_v36 = vmin.f32 %v620_v9, %v628_v27  ;;  %v631_v37 = vmin.f32 %v621_v10, %v629_v28 }
 0x391   : >> { %v636_v25 = vsel %vm245_vm1, %v633_v23, %v635_v24  ;;  %v637_v26 = vsel %vm245_vm1, %v635_v24, %v633_v23 }
 0x392   : >> { %v638_v3 = vadd.f32 %v636_v25, %v1510_v47  ;;  %v639_v31 = vadd.f32 %v637_v26, %v1515_v48 }
 0x394   : >> { %v643_v32 = vpop.permute.xlu0 %642  ;;  %v645_v33 = vpop.permute.xlu1 %644  ;;  %v640_v42 = vmin.f32 %v630_v36, %v638_v3  ;;  %v641_v2 = vmin.f32 %v631_v37, %v639_v31 }
 0x395   : >> { %v646_v34 = vsel %vm274_vm2, %v643_v32, %v645_v33  ;;  %v647_v35 = vsel %vm274_vm2, %v645_v33, %v643_v32 }
 0x396   : >> { %v648_v40 = vadd.f32 %v647_v35, %v1523_v52  ;;  %v649_v41 = vadd.f32 %v646_v34, %v1526_v53 }
 0x398   : >> { %v653_v43 = vpop.permute.xlu0 %652  ;;  %v655_v44 = vpop.permute.xlu1 %654  ;;  %v650_v49 = vmin.f32 %v640_v42, %v648_v40  ;;  %v651_v50 = vmin.f32 %v641_v2, %v649_v41 }
 0x399   : >> { %v656_v45 = vsel %vm303_vm4, %v653_v43, %v655_v44  ;;  %v657_v46 = vsel %vm303_vm4, %v655_v44, %v653_v43 }
 0x39a   : >> { %v658_v51 = vadd.f32 %v656_v45, %v1535_v6  ;;  %v659_v0 = vadd.f32 %v657_v46, %v1538_v7 }
 0x39c   : >> { %v660_v1 = vmin.f32 %v650_v49, %v658_v51  ;;  %v661_v55 = vmin.f32 %v651_v50, %v659_v0  ;;  %v563_v56 = vpop.permute.xlu0 %562  ;;  %v565_v57 = vpop.permute.xlu1 %564 }
 0x39d   : >> { %v567_v17 = vsel %vm216_vm0, %v565_v57, %v563_v56  ;;  %v566_v21 = vsel %vm216_vm0, %v563_v56, %v565_v57 }
 0x39e   : >> { %v662_v60 = vrot.slane %v660_v1, 7  ;;  %v668_v61 = vrot.slane %v660_v1, 1  ;;  %v663_v62 = vrot.slane %v661_v55, 7  ;;  %v669_v63 = vrot.slane %v661_v55, 1 }
 0x39f   : >> { %v568_v25 = vsub.f32 %v567_v17, %v1467_v29  ;;  %v569_v27 = vsub.f32 %v566_v21, %v1477_v30 }
 0x3a0   : >> { %v664_v8 = vsub.f32 %v662_v60, %v1420_v39  ;;  %v665_v9 = vsub.f32 %v663_v62, %v1420_v39  ;;  %v573_v10 = vpop.permute.xlu0 %572  ;;  %v575_v13 = vpop.permute.xlu1 %574  ;;  %v670_v16 = vsub.f32 %v668_v61, %v1436_v54  ;;  %v671_v38 = vsub.f32 %v669_v63, %v1436_v54 }
 0x3a1   : >> { %v576_v23 = vsel %vm245_vm1, %v573_v10, %v575_v13  ;;  %v577_v26 = vsel %vm245_vm1, %v575_v13, %v573_v10  ;;  %v570_v31 = vmax.f32 %v1733_v18, %v568_v25  ;;  %v571_v32 = vmax.f32 %v1735_v19, %v569_v27 }
 0x3a2   : >> { %v666_v14 = vmax.f32 %v660_v1, %v664_v8  ;;  %v667_v20 = vmax.f32 %v661_v55, %v665_v9  ;;  %v578_v28 = vsub.f32 %v576_v23, %v1510_v47  ;;  %v579_v3 = vsub.f32 %v577_v26, %v1515_v48 }
 0x3a4   : >> { %v672_v22 = vmax.f32 %v666_v14, %v670_v16  ;;  %v673_v24 = vmax.f32 %v667_v20, %v671_v38  ;;  %v580_v33 = vmax.f32 %v570_v31, %v578_v28  ;;  %v581_v34 = vmax.f32 %v571_v32, %v579_v3 }
 0x3a6   : >> { %674 = vrot.lane.b32.xlu0 %v672_v22, %s1160_s29  ;;  %676 = vrot.lane.b32.xlu1 %v673_v24, %s1160_s29 }
 0x3aa   : >> { %684 = vrot.lane.b32.xlu0 %v672_v22, %s1159_s28  ;;  %686 = vrot.lane.b32.xlu1 %v673_v24, %s1159_s28 }
 0x3ae   : >> { %582 = vrot.lane.b32.xlu0 %v580_v33, %s1161_s30  ;;  %584 = vrot.lane.b32.xlu1 %v581_v34, %s1161_s30 }
 0x3b2   : >> { %592 = vrot.lane.b32.xlu0 %v580_v33, %s1162_s4  ;;  %594 = vrot.lane.b32.xlu1 %v581_v34, %s1162_s4 }
 0x418   : >> { %v675_v35 = vpop.permute.xlu0 %674  ;;  %v677_v36 = vpop.permute.xlu1 %676 }
 0x419   : >> { %v678_v18 = vsel %vm216_vm0, %v675_v35, %v677_v36  ;;  %v679_v19 = vsel %vm216_vm0, %v677_v36, %v675_v35 }
 0x41a   : >> { %v680_v37 = vsub.f32 %v679_v19, %v1467_v29  ;;  %v681_v40 = vsub.f32 %v678_v18, %v1477_v30 }
 0x41c   : >> { %v685_v41 = vpop.permute.xlu0 %684  ;;  %v687_v42 = vpop.permute.xlu1 %686  ;;  %v682_v44 = vmax.f32 %v672_v22, %v680_v37  ;;  %v683_v45 = vmax.f32 %v673_v24, %v681_v40 }
 0x41d   : >> { %v688_v2 = vsel %vm245_vm1, %v685_v41, %v687_v42  ;;  %v689_v43 = vsel %vm245_vm1, %v687_v42, %v685_v41 }
 0x41e   : >> { %v690_v46 = vsub.f32 %v688_v2, %v1510_v47  ;;  %v691_v49 = vsub.f32 %v689_v43, %v1515_v48 }
 0x420   : >> { %v693_v50 = vmax.f32 %v683_v45, %v691_v49  ;;  %v692_v51 = vmax.f32 %v682_v44, %v690_v46  ;;  %v583_v0 = vpop.permute.xlu0 %582  ;;  %v585_v1 = vpop.permute.xlu1 %584 }
 0x421   : >> { %v586_v57 = vsel %vm274_vm2, %v583_v0, %v585_v1  ;;  %v587_v60 = vsel %vm274_vm2, %v585_v1, %v583_v0 }
 0x422   : >> { %696 = vrot.lane.b32.xlu1 %v693_v50, %s1161_s30  ;;  %694 = vrot.lane.b32.xlu0 %v692_v51, %s1161_s30  ;;  %v588_v63 = vsub.f32 %v587_v60, %v1523_v52  ;;  %v589_v8 = vsub.f32 %v586_v57, %v1526_v53 }
 0x424   : >> { %v593_v55 = vpop.permute.xlu0 %592  ;;  %v595_v56 = vpop.permute.xlu1 %594  ;;  %v590_v13 = vmax.f32 %v580_v33, %v588_v63  ;;  %v591_v14 = vmax.f32 %v581_v34, %v589_v8 }
 0x425   : >> { %v596_v61 = vsel %vm303_vm4, %v593_v55, %v595_v56  ;;  %v597_v62 = vsel %vm303_vm4, %v595_v56, %v593_v55 }
 0x426   : >> { %706 = vrot.lane.b32.xlu1 %v693_v50, %s1162_s4  ;;  %704 = vrot.lane.b32.xlu0 %v692_v51, %s1162_s4  ;;  %v598_v9 = vsub.f32 %v596_v61, %v1535_v6  ;;  %v599_v10 = vsub.f32 %v597_v62, %v1538_v7 }
 0x428   : >> { %v600_v16 = vmax.f32 %v590_v13, %v598_v9  ;;  %v601_v17 = vmax.f32 %v591_v14, %v599_v10 }
 0x42a   : >> { %v602_v20 = vsub.f32 %v1643_v58, %v600_v16  ;;  %v603_v38 = vsub.f32 %v1645_v59, %v601_v17 }
 0x42c   : >> { %v604_v21 = vmax.f32 %v602_v20, 0.0  ;;  %v605_v22 = vmax.f32 %v603_v38, 0.0 }
 0x42e   : >> { %v606_v23 = vmul.f32 %v1137_v11, %v604_v21  ;;  %v607_v24 = vmul.f32 %v1133_v12, %v605_v22 }
 0x430   : >> { %v608_v31 = vsub.f32 %v604_v21, %v606_v23  ;;  %v609_v59 = vsub.f32 %v605_v22, %v607_v24 }
 0x432   : >> { %v610_v40 = vmax.f32 %v608_v31, 0.0  ;;  %v611_v41 = vmax.f32 %v609_v59, 0.0 }
 0x434   : >> { %v612_v45 = vadd.f32 %v1137_v11, %v610_v40  ;;  %v613_v46 = vadd.f32 %v1133_v12, %v611_v41 }
 0x494   : >> { %v695_v25 = vpop.permute.xlu0 %694  ;;  %v697_v26 = vpop.permute.xlu1 %696 }
 0x495   : >> { %v698_v27 = vsel %vm274_vm2, %v695_v25, %v697_v26  ;;  %v699_v28 = vsel %vm274_vm2, %v697_v26, %v695_v25 }
 0x496   : >> { %v700_v3 = vsub.f32 %v699_v28, %v1523_v52  ;;  %v701_v58 = vsub.f32 %v698_v27, %v1526_v53 }
 0x498   : >> { %v705_v32 = vpop.permute.xlu0 %704  ;;  %v707_v33 = vpop.permute.xlu1 %706  ;;  %v702_v36 = vmax.f32 %v692_v51, %v700_v3  ;;  %v703_v18 = vmax.f32 %v693_v50, %v701_v58 }
 0x499   : >> { %v708_v34 = vsel %vm303_vm4, %v705_v32, %v707_v33  ;;  %v709_v35 = vsel %vm303_vm4, %v707_v33, %v705_v32 }
 0x49a   : >> { %v710_v19 = vsub.f32 %v708_v34, %v1535_v6  ;;  %v711_v37 = vsub.f32 %v709_v35, %v1538_v7 }
 0x49c   : >> { %v712_v42 = vmax.f32 %v702_v36, %v710_v19  ;;  %v713_v2 = vmax.f32 %v703_v18, %v711_v37 }
 0x49e   : >> { %v714_v43 = vsub.f32 %v1697_v5, %v712_v42  ;;  %v715_v44 = vsub.f32 %v1699_v4, %v713_v2 }
 0x4a0   : >> { %v716_v49 = vmax.f32 %v714_v43, 0.0  ;;  %v717_v0 = vmax.f32 %v715_v44, 0.0 }
 0x4a2   : >> { %v718_v51 = vmul.f32 %v716_v49, %v612_v45  ;;  %v719_v50 = vmul.f32 %v717_v0, %v613_v46 }
 0x4a4   : >> { %v720_v1 = vsub.f32 %v716_v49, %v718_v51  ;;  %v721_v55 = vsub.f32 %v717_v0, %v719_v50  ;;  %440 = sbr.rel (!%p438_p9) target bundleno = 529 (0x211), region = 78 }
 0x4a6   : >> { %v722_v56 = vmax.f32 %v720_v1, 0.0  ;;  %v723_v57 = vmax.f32 %v721_v55, 0.0 }
 0x4a8   : >> { %v724_v60 = vadd.f32 %v722_v56, %v612_v45   ;;  %v725_v61 = vadd.f32 %v723_v57, %v613_v46  }
 0x4aa   : >> { %v1929_v12 = vmov %v725_v61  ;;  %v1930_v11 = vmov %v724_v60  ;;  %726 = vst [vmem:[#allocation8] sm:$0xff] (%p438_p9), %v724_v60  ;;  %727 = vst [vmem:[#allocation8 + $0x8] sm:$0xff] (%p438_p9), %v725_v61 }
 0x4ab   : > { %1052 = shalt.err (!%p1049_p6)
}
 0x4ac   : > { %s1053_s24 = scalar_lea.hbm %s736_s7, 256  ;;  %s1057_s26 = scalar_lea.hbm %s1893_s3, 1024 }
 0x4ad   : > { %p1054_p8 = scmp.ne.s32.totalorder %s736_s7, %s1053_s24  ;;  %p1058_p5 = scmp.lt.u32.totalorder %s736_s7, %s1893_s3 }
 0x4ae   : > { %p1059_p11 = scmp.lt.u32.totalorder %s1057_s26, %s1053_s24  ;;  %p1061_p3 = scmp.lt.u32.totalorder %s1053_s24, %s736_s7 }
 0x4af   : > { %p1055_p10 = pnand %p1054_p8, %p1931_p13 }
 0x4b0   : > { %p1060_p9 = por %p1059_p11, %p1058_p5 }
 0x4b1   : > { %p1056_p2 = pneg %p1055_p10 }
 0x4b2   : > { %p1062_p7 = por %p1061_p3, %p1060_p9 }
 0x4b4   : > { %p1063_p12 = pnand %p1062_p7, %p1056_p2 }
 0x4b6   : > { %1066 = shalt.err (!%p1063_p12)
}
 0x4b7   : > { %852 = dma.vmem_to_hbm [thread:$0]  (%p1931_p13), %s739_s15, 256, %s736_s7, [#allocation4]  }
 0x4b8   : > { %1112 = dma.done.wait (%p1931_p13), [#allocation4], 256  }
 0x4b9   : > { %1114 = vsyncadd (%p1931_p13), [#allocation4], 4294967040 }
 0x4ba PF: > { %p13_p0 = scmp.ge.s32.totalorder %s1220_s21, 6   ;;  %s1932_s12 = smov %s1121_s13 }
 0x4bb   : > { %s1933_s13 = smov %s1125_s14  ;;  %s1934_s14 = smov %s1253_s8 }
 0x4bc   : > { %s1935_s15 = smov %s1220_s21  ;;  %15 = sbr.rel (!%p13_p0) target bundleno = 4 (0x4), region = 89 }
 0x4c3   :  { %751 = vsyncpa [#allocation3], 1 }
 0x4c4   :  { %753 = vsyncpa [#allocation3 + $0x1], 1 }
 0x4c5   :  { %754 = vsyncpa [#allocation6], 1 }
 0x4c6   :  { %755 = vsyncpa [#allocation4], 1 }
 0x4c7   :  { %757 = vsyncpa [#allocation4 + $0x1], 1 }

// kernel: tpu_custom_call.1
= control target key start
LH: loop header
LB: loop body
LE: loop exit
PB: predicated region body
PF: predicated region fallthrough
CT: control target
= control target key end

     0   :  { %8 = vsyncpa [#allocation3], 0  ;;  %s1994_s0 = inlined_call_operand.hbm [shape: f32[4,8,256], index: 0, kind: input, shape index: {}]   ;;  %s1995_s1 = inlined_call_operand.hbm [shape: s32[8,256], index: 1, kind: input, shape index: {}]   ;;  %s1996_s2 = inlined_call_operand.hbm [shape: s32[8,256], index: 2, kind: input, shape index: {}]   ;;  %s1997_s3 = inlined_call_operand.hbm [shape: f32[4,8,256], index: 3, kind: output, shape index: {}]  }
   0x1   :  { %10 = vsyncpa [#allocation3 + $0x1], 0 }
   0x2   :  { %11 = vsyncpa [#allocation6], 0 }
   0x3   :  { %12 = vsyncpa [#allocation4], 0 }
   0x4   :  { %14 = vsyncpa [#allocation4 + $0x1], 0  ;;  %s1250_s12 = smov 0   ;;  %s1252_s13 = smov 0  }
   0x5   :  { %s1254_s14 = smov 0   ;;  %s1256_s15 = smov 0  }
   0x6 LB: > { %s1271_s16 = sadd.s32 4294967295, %s1195_s15   ;;  %s873_s17 = sadd.s32 4294967294, %s1195_s15   ;;  %s1195_s15 = sphi %s1256_s15, %s2026_s15   ;;  %s1191_s14 = sphi %s1254_s14, %s2025_s14   ;;  %s1187_s13 = sphi %s1252_s13, %s2024_s13   ;;  %s1183_s12 = sphi %s1250_s12, %s2023_s12  }
   0x7   : > { %p40_p0 = scmp.ne.s32.totalorder %s1187_s13, %s1183_s12  ;;  %p1998_p1 = scmp.eq.s32.totalorder %s1271_s16, 0 }
   0x8   : > { %p112_p3 = scmp.eq.s32.totalorder %s873_s17, 3  ;;  %p874_p5 = scmp.ge.s32.totalorder %s1195_s15, 1 }
   0x9   : > { %p1280_p4 = por %p1998_p1, %p40_p0  ;;  %p119_p7 = scmp.lt.s32.totalorder %s1195_s15, 5 }
   0xa   : > { %p1285_p6 = por %p112_p3, %p40_p0  ;;  %s1217_s21 = smov [#allocation5]  }
   0xb   : > { %s2001_s18 = scalar_select %p1280_p4, 1, 0 }
   0xc   : > { %s2002_s19 = scalar_select %p1285_p6, 1, 0 }
   0xd   : > { %p1290_p8 = pnand %p874_p5, %p119_p7  ;;  %s132_s22 = sshll.u32 %s1217_s21, 4  ;;  %s133_s22 = int_to_ptr.vmem [resolvable:$true] %s132_s22 }
   0xe   : > { %s1218_s23 = smov [#allocation7]   ;;  %s1305_s26 = sadd.s32 1, %s1195_s15  }
   0xf   : > { %s2003_s20 = scalar_select %p1290_p8, 1, 0 }
  0x10   : > { %p915_p9 = pneg %p1290_p8  ;;  %s143_s24 = sshll.u32 %s1218_s23, 4  ;;  %s1302_s24 = int_to_ptr.vmem [resolvable:$true] %s143_s24 }
  0x11   : > { %s24_s27 = ssub.s32 %s1195_s15, %s1305_s26  ;;  %s1019_s30 = scalar_lea.hbm %s1995_s1, 256 }
  0x12   : > { %p1298_p10 = pnand %p915_p9, %p1998_p1  ;;  %p1020_p11 = scmp.ne.s32.totalorder %s1995_s1, %s1019_s30 }
  0x13   : > { %p1026_p3 = scmp.lt.u32.totalorder %s1019_s30, %s1995_s1 }
  0x14   : > { %p1021_p12 = pneg %p1298_p10 }
  0x16   : > { %p1022_p13 = pnand %p1021_p12, %p1020_p11 }
  0x18   : > { %p1023_p0 = pneg %p1022_p13 }
  0x1a   : > { %p1028_p5 = pnand %p1026_p3, %p1023_p0 }
  0x1c   : > { %1031 = shalt.err (!%p1028_p5)
}
  0x1d   : > { %s1032_s8 = scalar_lea.vmem %s133_s22, 256  ;;  %p1040_p2 = scmp.lt.s32.totalorder %s133_s22, %s133_s22 }
  0x1e   : > { %p1033_p7 = scmp.ne.s32.totalorder %s133_s22, %s1032_s8  ;;  %p1041_p6 = scmp.lt.s32.totalorder %s1032_s8, %s1032_s8 }
  0x20   : > { %p1035_p9 = pnand %p1033_p7, %p1021_p12  ;;  %p1042_p4 = por %p1041_p6, %p1040_p2 }
  0x22   : > { %p1036_p1 = pneg %p1035_p9 }
  0x24   : > { %p1043_p8 = pnand %p1042_p4, %p1036_p1 }
  0x26   : > { %1046 = shalt.err (!%p1043_p8)
}
  0x27   : > { %918 = dma.hbm_to_vmem [thread:$0]  (!%p1298_p10), %s1995_s1, 256, %s133_s22, [#allocation6]  }
  0x28   : > { %s1047_s21 = scalar_lea.hbm %s1996_s2, 256 }
  0x29   : > { %p1048_p11 = scmp.ne.s32.totalorder %s1996_s2, %s1047_s21  ;;  %p1054_p4 = scmp.lt.u32.totalorder %s1047_s21, %s1996_s2 }
  0x2b   : > { %p1050_p2 = pnand %p1048_p11, %p1021_p12 }
  0x2d   : > { %p1051_p1 = pneg %p1050_p2 }
  0x2f   : > { %p1056_p6 = pnand %p1054_p4, %p1051_p1 }
  0x31   : > { %1059 = shalt.err (!%p1056_p6)
}
  0x32   : > { %s1060_s22 = scalar_lea.vmem %s1302_s24, 256  ;;  %p1068_p3 = scmp.lt.s32.totalorder %s1302_s24, %s1302_s24 }
  0x33   : > { %p1061_p8 = scmp.ne.s32.totalorder %s1302_s24, %s1060_s22  ;;  %p1069_p5 = scmp.lt.s32.totalorder %s1060_s22, %s1060_s22 }
  0x35   : > { %p1063_p13 = pnand %p1061_p8, %p1021_p12  ;;  %p1070_p7 = por %p1069_p5, %p1068_p3 }
  0x37   : > { %p1064_p0 = pneg %p1063_p13 }
  0x39   : > { %p1071_p9 = pnand %p1070_p7, %p1064_p0 }
  0x3b   : > { %1074 = shalt.err (!%p1071_p9)
}
  0x3c   : > { %921 = dma.hbm_to_vmem [thread:$0]  (!%p1298_p10), %s1996_s2, 256, %s1302_s24, [#allocation6]  }
  0x3d   : > { %p25_p12 = scmp.eq.s32.totalorder %s24_s27, 0  ;;  %s27_s6 = sadd.s32 1, %s1191_s14 }
  0x3e   : > { %p34_p11 = scmp.ne.s32.totalorder %s1191_s14, %s1187_s13  ;;  %p35_p2 = scmp.eq.s32.totalorder %s1195_s15, 0 }
  0x3f   : > { %s1364_s25 = scalar_select %p25_p12, %s1191_s14, %s27_s6  }
  0x40   : > { %p36_p1 = por %p35_p2, %p34_p11  ;;  %p2005_p4 = scmp.eq.s32.totalorder %s1271_s16, 3 }
  0x41   : > { %p932_p8 = scmp.lt.s32.totalorder %s1195_s15, 4  ;;  %s154_s8 = sand.u32 1, %s1191_s14  }
  0x42   : > { %p1368_p6 = por %p2005_p4, %p34_p11  ;;  %s878_s9 = sshll.u32 %s154_s8, 4 }
  0x43   : > { %s901_s10 = sshll.u32 %s1195_s15, 8  ;;  %s158_s27 = scalar_lea.vmem [#allocation2], %s878_s9 }
  0x44   : > { %s1378_s24 = scalar_lea.hbm %s1994_s0, %s901_s10  ;;  %s166_s21 = sshll.u32 %s158_s27, 4  ;;  %s1380_s21 = int_to_ptr.vmem [resolvable:$true] %s166_s21 }
  0x45   : > { %p1382_p10 = pnand %p932_p8, %p36_p1  ;;  %s155_s28 = scalar_lea.sflag [#allocation3], %s154_s8 }
  0x46   : > { %s1075_s29 = scalar_lea.hbm %s1378_s24, 256  ;;  %s1080_s4 = scalar_lea.hbm %s1994_s0, 1024 }
  0x47   : > { %p1076_p13 = scmp.ne.s32.totalorder %s1378_s24, %s1075_s29  ;;  %p1077_p0 = pneg %p1382_p10 }
  0x48   : > { %p1081_p7 = scmp.lt.u32.totalorder %s1378_s24, %s1994_s0  ;;  %p1082_p9 = scmp.lt.u32.totalorder %s1080_s4, %s1075_s29 }
  0x49   : > { %p1078_p3 = pnand %p1077_p0, %p1076_p13  ;;  %p1084_p11 = scmp.lt.u32.totalorder %s1075_s29, %s1378_s24 }
  0x4a   : > { %p1083_p12 = por %p1082_p9, %p1081_p7 }
  0x4b   : > { %p1079_p5 = pneg %p1078_p3 }
  0x4c   : > { %p1085_p2 = por %p1084_p11, %p1083_p12 }
  0x4e   : > { %p1086_p1 = pnand %p1085_p2, %p1079_p5 }
  0x50   : > { %1089 = shalt.err (!%p1086_p1)
}
  0x51   : > { %s1090_s8 = scalar_lea.vmem %s1380_s21, 256  ;;  %s1219_s9 = smov [#allocation2]  }
  0x52   : > { %p1091_p4 = scmp.ne.s32.totalorder %s1380_s21, %s1090_s8  ;;  %s1095_s10 = sshll.u32 %s1219_s9, 4  ;;  %s1096_s10 = int_to_ptr.vmem [resolvable:$false] %s1095_s10 }
  0x53   : > { %s1097_s11 = scalar_lea.vmem %s1096_s10, 512  ;;  %p1098_p3 = scmp.lt.s32.totalorder %s1380_s21, %s1096_s10 }
  0x54   : > { %p1093_p8 = pnand %p1091_p4, %p1077_p0  ;;  %p1099_p7 = scmp.lt.s32.totalorder %s1097_s11, %s1090_s8 }
  0x56   : > { %p1094_p13 = pneg %p1093_p8  ;;  %p1100_p9 = por %p1099_p7, %p1098_p3 }
  0x58   : > { %p1101_p12 = pnand %p1100_p9, %p1094_p13 }
  0x5a   : > { %1104 = shalt.err (!%p1101_p12)
}
  0x5b   : > { %925 = dma.hbm_to_vmem [thread:$0]  (!%p1382_p10), %s1378_s24, 256, %s1380_s21, %s155_s28  }
  0x5c   : > { %p2008_p5 = scmp.ne.s32.totalorder %s2003_s20, 0 }
  0x5d   : > { %s1414_s17 = sand.u32 (!%p2008_p5), 1, %s1187_s13   ;;  %p2009_p0 = scmp.ne.s32.totalorder (!%p2008_p5), %s2001_s18, 0 }
  0x5e   : > { %175 = sbr.rel (%p2008_p5) target bundleno = 1208 (0x4b8), region = 32  ;;  %s882_s27 = sshll.u32 (!%p2008_p5), %s1414_s17, 4 }
  0x5f   : > { %s178_s29 = scalar_lea.sflag (!%p2008_p5), [#allocation3], %s1414_s17  ;;  %s181_s30 = scalar_lea.vmem (!%p2008_p5), [#allocation2], %s882_s27 }
  0x65   : > { %1170 = dma.done.wait (%p2009_p0), %s178_s29, 256  }
  0x66   : > { %1172 = vsyncadd (%p2009_p0), %s178_s29, 4294967040  ;;  %p2010_p10 = scmp.eq.s32.totalorder %s1271_s16, 0 }
  0x68   : > { %1174 = dma.done.wait (%p2010_p10), [#allocation6], 512   ;;  %p2011_p11 = pmov %p2010_p10 }
  0x69   : > { %v1428_v0 = vld [vmem:[#allocation5] sm:$0xff]  ;;  %s1220_s20 = smov 112   ;;  %s1221_s24 = smov 16   ;;  %v1434_v1 = vld [vmem:[#allocation5 + $0x8] sm:$0xff]  ;;  %v1440_v2 = vld [vmem:[#allocation7 + $0x8] sm:$0xff]  ;;  %v218_v6 = vlaneseq  ;;  %v1224_v38 = vmov inf  }
  0x6a   : > { %1176 = vsyncadd (%p2011_p11), [#allocation6], 4294966784  ;;  %265 = vrot.lane.b32.xlu1 %v1428_v0, %s1220_s20  ;;  %234 = vrot.lane.b32.xlu0 %v1428_v0, %s1221_s24  ;;  %v1442_v3 = vld [vmem:[#allocation7] sm:$0xff]  ;;  %s1222_s18 = smov 1   ;;  %s1223_s21 = smov 127   ;;  %v1460_v4 = vld [vmem:[%s181_s30 + $0x8] sm:$0xff]  }
  0x6b   : > { %v1462_v5 = vld [vmem:[%s181_s30] sm:$0xff]   ;;  %v219_v7 = vshrl.u32 %v218_v6, 7  ;;  %v1488_v15 = vand.u32 127, %v218_v6  ;;  %v353_v37 = vrot.slane %v1460_v4, 7  ;;  %v359_v49 = vrot.slane %v1460_v4, 1  ;;  %s1676_s23 = scalar_lea.vmem [#allocation8], %s882_s27 }
  0x6c   : > { %v352_v46 = vrot.slane %v1462_v5, 7  ;;  %s1688_s28 = smov 0  }
  0x6d   : > { %v220_v10 = vrot.slane %v219_v7, 7  ;;  %v227_v14 = vrot.slane %v219_v7, 1  ;;  %vm240_vm0 = vcmp.lt.s32.totalorder %v1488_v15, 16  ;;  %vm269_vm1 = vcmp.lt.s32.totalorder %v1488_v15, 112 }
  0x6e   : > { %267 = vrot.lane.b32.xlu1 %v1434_v1, %s1220_s20  ;;  %236 = vrot.lane.b32.xlu0 %v1434_v1, %s1221_s24  ;;  %vm298_vm2 = vcmp.lt.s32.totalorder %v1488_v15, 1  ;;  %vm327_vm4 = vcmp.lt.s32.totalorder %v1488_v15, 127 }
  0x6f   : > { %v221_v13 = vsub.s32 %v220_v10, %v219_v7  ;;  %v228_v19 = vsub.s32 %v227_v14, %v219_v7  ;;  %v358_v7 = vrot.slane %v1462_v5, 1 }
  0x71   : > { %v223_v18 = vsub.s32 0, %v221_v13  ;;  %v230_v23 = vsub.s32 0, %v228_v19 }
  0x72   : > { %303 = vrot.lane.b32.xlu1 %v1440_v2, %s1222_s18  ;;  %301 = vrot.lane.b32.xlu0 %v1442_v3, %s1222_s18 }
  0x73   : > { %v886_v22 = vmin.u32 %v223_v18, %v221_v13  ;;  %v887_v29 = vmin.u32 %v230_v23, %v228_v19 }
  0x75   : > { %vm225_vm3 = vcmp.eq.s32.totalorder %v886_v22, 1  ;;  %vm232_vm5 = vcmp.eq.s32.totalorder %v887_v29, 1 }
  0x76   : > { %245 = vrot.lane.b32.xlu1 %v1440_v2, %s1221_s24  ;;  %243 = vrot.lane.b32.xlu0 %v1442_v3, %s1221_s24  ;;  %v1510_v39 = vsel %vm225_vm3, 0.0, %v1224_v38  ;;  %v1526_v54 = vsel %vm232_vm5, 0.0, %v1224_v38 }
  0x77   : > { %v355_v48 = vadd.f32 %v353_v37, %v1510_v39  ;;  %v354_v62 = vadd.f32 %v352_v46, %v1510_v39 }
  0x7a   : > { %332 = vrot.lane.b32.xlu1 %v1440_v2, %s1223_s21  ;;  %330 = vrot.lane.b32.xlu0 %v1442_v3, %s1223_s21 }
  0x7e   : > { %274 = vrot.lane.b32.xlu1 %v1440_v2, %s1220_s20  ;;  %272 = vrot.lane.b32.xlu0 %v1442_v3, %s1220_s20 }
  0x82   : > { %366 = vrot.lane.b32.xlu1 %v1460_v4, %s1221_s24  ;;  %364 = vrot.lane.b32.xlu0 %v1462_v5, %s1221_s24 }
  0x86   : > { %296 = vrot.lane.b32.xlu1 %v1434_v1, %s1222_s18  ;;  %294 = vrot.lane.b32.xlu0 %v1428_v0, %s1222_s18 }
  0x8a   : > { %376 = vrot.lane.b32.xlu1 %v1460_v4, %s1220_s20  ;;  %374 = vrot.lane.b32.xlu0 %v1462_v5, %s1220_s20 }
  0x8e   : > { %325 = vrot.lane.b32.xlu1 %v1434_v1, %s1223_s21  ;;  %323 = vrot.lane.b32.xlu0 %v1428_v0, %s1223_s21 }
  0x92   : > { %386 = vrot.lane.b32.xlu1 %v1460_v4, %s1222_s18  ;;  %384 = vrot.lane.b32.xlu0 %v1462_v5, %s1222_s18 }
  0x96   : > { %396 = vrot.lane.b32.xlu1 %v1460_v4, %s1223_s21  ;;  %394 = vrot.lane.b32.xlu0 %v1462_v5, %s1223_s21 }
  0xdc   : > { %v266_v8 = vpop.permute.xlu1 %265  ;;  %v235_v9 = vpop.permute.xlu0 %234 }
  0xe0   : > { %v268_v11 = vpop.permute.xlu1 %267  ;;  %v237_v12 = vpop.permute.xlu0 %236 }
  0xe1   : > { %v242_v24 = vsel %vm240_vm0, %v237_v12, %v235_v9  ;;  %v241_v25 = vsel %vm240_vm0, %v235_v9, %v237_v12  ;;  %v270_v30 = vsel %vm269_vm1, %v266_v8, %v268_v11  ;;  %v271_v31 = vsel %vm269_vm1, %v268_v11, %v266_v8 }
  0xe2   : > { %v251_v28 = vsub.s32 %v242_v24, %v1428_v0  ;;  %v252_v32 = vsub.s32 %v241_v25, %v1434_v1  ;;  %v280_v40 = vsub.s32 %v270_v30, %v1428_v0  ;;  %v281_v41 = vsub.s32 %v271_v31, %v1434_v1 }
  0xe3   : > { %v357_v11 = vmin.f32 %v1460_v4, %v355_v48  ;;  %v361_v12 = vadd.f32 %v359_v49, %v1526_v54 }
  0xe4   : > { %v304_v16 = vpop.permute.xlu1 %303  ;;  %v302_v17 = vpop.permute.xlu0 %301  ;;  %v254_v42 = vsub.s32 0, %v251_v28  ;;  %v257_v43 = vsub.s32 0, %v252_v32  ;;  %v283_v55 = vsub.s32 0, %v280_v40  ;;  %v286_v56 = vsub.s32 0, %v281_v41 }
  0xe5   : > { %v305_v33 = vsel %vm298_vm2, %v302_v17, %v304_v16  ;;  %v306_v34 = vsel %vm298_vm2, %v304_v16, %v302_v17 }
  0xe6   : > { %v309_v44 = vsub.s32 %v306_v34, %v1442_v3  ;;  %v310_v45 = vsub.s32 %v305_v33, %v1440_v2  ;;  %v888_v57 = vmin.u32 %v254_v42, %v251_v28  ;;  %v889_v59 = vmin.u32 %v257_v43, %v252_v32 }
  0xe7   : > { %v890_v13 = vmin.u32 %v283_v55, %v280_v40  ;;  %v891_v14 = vmin.u32 %v286_v56, %v281_v41  ;;  %v360_v28 = vadd.f32 %v358_v7, %v1526_v54 }
  0xe8   : > { %v246_v20 = vpop.permute.xlu1 %245  ;;  %v244_v21 = vpop.permute.xlu0 %243  ;;  %v312_v60 = vsub.s32 0, %v309_v44  ;;  %v315_v61 = vsub.s32 0, %v310_v45  ;;  %vm259_vm8 = vcmp.eq.s32.totalorder %v888_v57, 1  ;;  %vm260_vm9 = vcmp.eq.s32.totalorder %v889_v59, 1 }
  0xe9   : > { %v248_v51 = vsel %vm240_vm0, %v246_v20, %v244_v21  ;;  %v247_v58 = vsel %vm240_vm0, %v244_v21, %v246_v20  ;;  %vm288_vm14 = vcmp.eq.s32.totalorder %v890_v13, 1  ;;  %vm289_vm15 = vcmp.eq.s32.totalorder %v891_v14, 1 }
  0xea   : > { %vm249_vm6 = vcmp.eq.s32.totalorder %v248_v51, %v1442_v3  ;;  %vm250_vm7 = vcmp.eq.s32.totalorder %v247_v58, %v1440_v2  ;;  %v892_v17 = vmin.u32 %v312_v60, %v309_v44  ;;  %v893_v18 = vmin.u32 %v315_v61, %v310_v45 }
  0xeb   : > { %vm261_vm10 = vmand %vm249_vm6, %vm259_vm8 }
  0xec   : > { %v333_v26 = vpop.permute.xlu1 %332  ;;  %v331_v27 = vpop.permute.xlu0 %330  ;;  %vm1546_vm11 = vmand %vm250_vm7, %vm260_vm9  ;;  %v1557_v29 = vsel %vm261_vm10, 0.0, %v1224_v38  ;;  %vm317_vm8 = vcmp.eq.s32.totalorder %v892_v17, 1  ;;  %vm318_vm9 = vcmp.eq.s32.totalorder %v893_v18, 1 }
  0xed   : > { %v334_v52 = vsel %vm327_vm4, %v331_v27, %v333_v26  ;;  %v335_v53 = vsel %vm327_vm4, %v333_v26, %v331_v27  ;;  %v363_v26 = vmin.f32 %v357_v11, %v361_v12  ;;  %v356_v27 = vmin.f32 %v1462_v5, %v354_v62 }
  0xee   : > { %v338_v63 = vsub.s32 %v334_v52, %v1442_v3  ;;  %v339_v6 = vsub.s32 %v335_v53, %v1440_v2  ;;  %v1567_v30 = vsel %vm1546_vm11, 0.0, %v1224_v38 }
  0xef   : > { %v362_v44 = vmin.f32 %v356_v27, %v360_v28 }
  0xf0   : > { %v275_v35 = vpop.permute.xlu1 %274  ;;  %v273_v36 = vpop.permute.xlu0 %272  ;;  %v341_v21 = vsub.s32 0, %v338_v63  ;;  %v344_v22 = vsub.s32 0, %v339_v6 }
  0xf1   : > { %v276_v10 = vsel %vm269_vm1, %v273_v36, %v275_v35  ;;  %v277_v16 = vsel %vm269_vm1, %v275_v35, %v273_v36 }
  0xf2   : > { %vm278_vm12 = vcmp.eq.s32.totalorder %v276_v10, %v1442_v3  ;;  %vm279_vm13 = vcmp.eq.s32.totalorder %v277_v16, %v1440_v2  ;;  %v894_v33 = vmin.u32 %v341_v21, %v338_v63  ;;  %v895_v34 = vmin.u32 %v344_v22, %v339_v6 }
  0xf3   : > { %vm1560_vm5 = vmand %vm278_vm12, %vm288_vm14 }
  0xf4   : > { %v367_v47 = vpop.permute.xlu1 %366  ;;  %v365_v50 = vpop.permute.xlu0 %364  ;;  %vm1576_vm7 = vmand %vm279_vm13, %vm289_vm15  ;;  %vm346_vm14 = vcmp.eq.s32.totalorder %v894_v33, 1  ;;  %vm347_vm15 = vcmp.eq.s32.totalorder %v895_v34, 1 }
  0xf5   : > { %v368_v31 = vsel %vm240_vm0, %v365_v50, %v367_v47  ;;  %v369_v32 = vsel %vm240_vm0, %v367_v47, %v365_v50  ;;  %v1600_v47 = vsel %vm1560_vm5, 0.0, %v1224_v38  ;;  %v1605_v48 = vsel %vm1576_vm7, 0.0, %v1224_v38 }
  0xf6   : > { %v370_v45 = vadd.f32 %v369_v32, %v1557_v29  ;;  %v371_v46 = vadd.f32 %v368_v31, %v1567_v30 }
  0xf8   : > { %v297_v8 = vpop.permute.xlu1 %296  ;;  %v295_v9 = vpop.permute.xlu0 %294  ;;  %v372_v56 = vmin.f32 %v362_v44, %v370_v45  ;;  %v373_v57 = vmin.f32 %v363_v26, %v371_v46 }
  0xf9   : > { %v300_v19 = vsel %vm298_vm2, %v297_v8, %v295_v9  ;;  %v299_v23 = vsel %vm298_vm2, %v295_v9, %v297_v8 }
  0xfa   : > { %vm307_vm3 = vcmp.eq.s32.totalorder %v300_v19, %v1428_v0  ;;  %vm308_vm6 = vcmp.eq.s32.totalorder %v299_v23, %v1434_v1 }
  0xfb   : > { %vm1580_vm10 = vmand %vm307_vm3, %vm317_vm8 }
  0xfc   : > { %v377_v24 = vpop.permute.xlu1 %376  ;;  %v375_v25 = vpop.permute.xlu0 %374  ;;  %vm320_vm11 = vmand %vm308_vm6, %vm318_vm9  ;;  %v1613_v52 = vsel %vm1580_vm10, 0.0, %v1224_v38 }
  0xfd   : > { %v378_v41 = vsel %vm269_vm1, %v375_v25, %v377_v24  ;;  %v379_v42 = vsel %vm269_vm1, %v377_v24, %v375_v25  ;;  %v1616_v53 = vsel %vm320_vm11, 0.0, %v1224_v38 }
  0xfe   : > { %v380_v49 = vadd.f32 %v378_v41, %v1600_v47  ;;  %v381_v50 = vadd.f32 %v379_v42, %v1605_v48 }
 0x100   : > { %v326_v36 = vpop.permute.xlu1 %325  ;;  %v324_v37 = vpop.permute.xlu0 %323  ;;  %v382_v60 = vmin.f32 %v372_v56, %v380_v49  ;;  %v383_v61 = vmin.f32 %v373_v57, %v381_v50 }
 0x101   : > { %v328_v2 = vsel %vm327_vm4, %v324_v37, %v326_v36  ;;  %v329_v43 = vsel %vm327_vm4, %v326_v36, %v324_v37 }
 0x102   : > { %vm336_vm12 = vcmp.eq.s32.totalorder %v328_v2, %v1428_v0  ;;  %vm337_vm13 = vcmp.eq.s32.totalorder %v329_v43, %v1434_v1 }
 0x103   : > { %vm348_vm3 = vmand %vm336_vm12, %vm346_vm14 }
 0x104   : > { %v387_v51 = vpop.permute.xlu1 %386  ;;  %v385_v0 = vpop.permute.xlu0 %384  ;;  %vm349_vm5 = vmand %vm337_vm13, %vm347_vm15  ;;  %v1625_v6 = vsel %vm348_vm3, 0.0, %v1224_v38 }
 0x105   : > { %v388_v1 = vsel %vm298_vm2, %v385_v0, %v387_v51  ;;  %v389_v55 = vsel %vm298_vm2, %v387_v51, %v385_v0  ;;  %v1628_v7 = vsel %vm349_vm5, 0.0, %v1224_v38 }
 0x106   : > { %v390_v58 = vadd.f32 %v389_v55, %v1613_v52  ;;  %v391_v59 = vadd.f32 %v388_v1, %v1616_v53 }
 0x108   : > { %v397_v62 = vpop.permute.xlu1 %396  ;;  %v395_v63 = vpop.permute.xlu0 %394  ;;  %v392_v10 = vmin.f32 %v382_v60, %v390_v58  ;;  %v393_v11 = vmin.f32 %v383_v61, %v391_v59 }
 0x109   : > { %v398_v8 = vsel %vm327_vm4, %v395_v63, %v397_v62  ;;  %v399_v9 = vsel %vm327_vm4, %v397_v62, %v395_v63 }
 0x10a   : > { %v400_v12 = vadd.f32 %v398_v8, %v1625_v6  ;;  %v401_v13 = vadd.f32 %v399_v9, %v1628_v7 }
 0x10c   : > { %v402_v14 = vmin.f32 %v392_v10, %v400_v12  ;;  %v403_v16 = vmin.f32 %v393_v11, %v401_v13 }
 0x10e   : > { %v404_v17 = vrot.slane %v402_v14, 7  ;;  %v405_v18 = vrot.slane %v403_v16, 7  ;;  %v411_v19 = vrot.slane %v403_v16, 1  ;;  %v410_v20 = vrot.slane %v402_v14, 1 }
 0x110   : > { %v407_v38 = vsub.f32 %v405_v18, %v1510_v39  ;;  %v406_v21 = vsub.f32 %v404_v17, %v1510_v39  ;;  %v413_v23 = vsub.f32 %v411_v19, %v1526_v54  ;;  %v412_v25 = vsub.f32 %v410_v20, %v1526_v54 }
 0x112   : > { %v409_v22 = vmax.f32 %v403_v16, %v407_v38  ;;  %v408_v24 = vmax.f32 %v402_v14, %v406_v21 }
 0x114   : > { %v415_v26 = vmax.f32 %v409_v22, %v413_v23  ;;  %v414_v27 = vmax.f32 %v408_v24, %v412_v25 }
 0x116   : > { %418 = vrot.lane.b32.xlu1 %v415_v26, %s1221_s24  ;;  %416 = vrot.lane.b32.xlu0 %v414_v27, %s1221_s24 }
 0x11a   : > { %428 = vrot.lane.b32.xlu1 %v415_v26, %s1220_s20  ;;  %426 = vrot.lane.b32.xlu0 %v414_v27, %s1220_s20 }
 0x188   : > { %v419_v28 = vpop.permute.xlu1 %418  ;;  %v417_v3 = vpop.permute.xlu0 %416 }
 0x189   : > { %v420_v31 = vsel %vm240_vm0, %v417_v3, %v419_v28  ;;  %v421_v32 = vsel %vm240_vm0, %v419_v28, %v417_v3 }
 0x18a   : > { %v422_v33 = vsub.f32 %v421_v32, %v1557_v29  ;;  %v423_v34 = vsub.f32 %v420_v31, %v1567_v30 }
 0x18c   : > { %v429_v35 = vpop.permute.xlu1 %428  ;;  %v427_v36 = vpop.permute.xlu0 %426  ;;  %v424_v41 = vmax.f32 %v414_v27, %v422_v33  ;;  %v425_v42 = vmax.f32 %v415_v26, %v423_v34 }
 0x18d   : > { %v430_v37 = vsel %vm269_vm1, %v427_v36, %v429_v35  ;;  %v431_v40 = vsel %vm269_vm1, %v429_v35, %v427_v36 }
 0x18e   : > { %v432_v2 = vsub.f32 %v430_v37, %v1600_v47  ;;  %v433_v43 = vsub.f32 %v431_v40, %v1605_v48 }
 0x190   : > { %v435_v44 = vmax.f32 %v425_v42, %v433_v43  ;;  %v434_v45 = vmax.f32 %v424_v41, %v432_v2 }
 0x192   : > { %438 = vrot.lane.b32.xlu1 %v435_v44, %s1222_s18  ;;  %436 = vrot.lane.b32.xlu0 %v434_v45, %s1222_s18 }
 0x196   : > { %448 = vrot.lane.b32.xlu1 %v435_v44, %s1223_s21  ;;  %446 = vrot.lane.b32.xlu0 %v434_v45, %s1223_s21 }
 0x204   : > { %v439_v46 = vpop.permute.xlu1 %438  ;;  %v437_v49 = vpop.permute.xlu0 %436 }
 0x205   : > { %v440_v50 = vsel %vm298_vm2, %v437_v49, %v439_v46  ;;  %v441_v51 = vsel %vm298_vm2, %v439_v46, %v437_v49 }
 0x206   : > { %v442_v0 = vsub.f32 %v441_v51, %v1613_v52  ;;  %v443_v1 = vsub.f32 %v440_v50, %v1616_v53 }
 0x208   : > { %v449_v55 = vpop.permute.xlu1 %448  ;;  %v447_v56 = vpop.permute.xlu0 %446  ;;  %v444_v59 = vmax.f32 %v434_v45, %v442_v0  ;;  %v445_v60 = vmax.f32 %v435_v44, %v443_v1 }
 0x209   : > { %v450_v57 = vsel %vm327_vm4, %v447_v56, %v449_v55  ;;  %v451_v58 = vsel %vm327_vm4, %v449_v55, %v447_v56 }
 0x20a   : > { %v452_v61 = vsub.f32 %v450_v57, %v1625_v6  ;;  %v453_v62 = vsub.f32 %v451_v58, %v1628_v7 }
 0x20c   : > { %v454_v63 = vmax.f32 %v444_v59, %v452_v61  ;;  %v455_v8 = vmax.f32 %v445_v60, %v453_v62 }
 0x20e   : > { %v456_v9 = vsub.f32 %v1462_v5, %v454_v63  ;;  %v457_v10 = vsub.f32 %v1460_v4, %v455_v8 }
 0x210   : > { %v458_v11 = vmax.f32 %v456_v9, 0.0   ;;  %v459_v12 = vmax.f32 %v457_v10, 0.0  }
 0x211 LB: >> { %s1225_s22 = smov 112   ;;  %s1226_s4 = smov 16   ;;  %v470_v13 = vrot.slane %v1211_v5, 7  ;;  %v471_v14 = vrot.slane %v1207_v4, 7  ;;  %v476_v17 = vrot.slane %v1211_v5, 1  ;;  %v477_v19 = vrot.slane %v1207_v4, 1  ;;  %s1215_s28 = sphi %s1688_s28, %s465_s28   ;;  %v1211_v5 = vphi %v1462_v5, %v1791_v5   ;;  %v1207_v4 = vphi %v1460_v4, %v1793_v4   ;;  %v1203_v11 = vphi %v458_v11, %v2021_v11   ;;  %v1199_v12 = vphi %v459_v12, %v2020_v12  }
 0x212   : >> { %492 = vrot.lane.b32.xlu1 %v1211_v5, %s1225_s22  ;;  %482 = vrot.lane.b32.xlu0 %v1211_v5, %s1226_s4  ;;  %s1227_s5 = smov 1   ;;  %s1228_s6 = smov 127  }
 0x213   : >> { %v472_v16 = vadd.f32 %v470_v13, %v1510_v39  ;;  %v473_v18 = vadd.f32 %v471_v14, %v1510_v39  ;;  %v478_v22 = vadd.f32 %v476_v17, %v1526_v54  ;;  %v479_v24 = vadd.f32 %v477_v19, %v1526_v54  ;;  %s465_s28 = sadd.s32 1, %s1215_s28  }
 0x214   : >> { %p462_p2 = scmp.ge.s32.totalorder %s465_s28, 20  }
 0x215   : >> { %v474_v21 = vmin.f32 %v1211_v5, %v472_v16  ;;  %v475_v23 = vmin.f32 %v1207_v4, %v473_v18  ;;  %s902_s8 = sshll.u32 (%p462_p2), %s1271_s16, 8  ;;  %s767_s27 = sshll.u32 (%p462_p2), %s1676_s23, 4  ;;  %s768_s27 = int_to_ptr.vmem [resolvable:$true] %s767_s27 }
 0x216   : >> { %494 = vrot.lane.b32.xlu1 %v1207_v4, %s1225_s22  ;;  %484 = vrot.lane.b32.xlu0 %v1207_v4, %s1226_s4  ;;  %s1956_s11 = scalar_lea.hbm (%p462_p2), %s1997_s3, %s902_s8  ;;  %s753_s29 = scalar_lea.sflag (%p462_p2), [#allocation4], %s1414_s17 }
 0x217   : >> { %v480_v26 = vmin.f32 %v474_v21, %v478_v22  ;;  %v481_v28 = vmin.f32 %v475_v23, %v479_v24  ;;  %s1105_s30 = scalar_lea.vmem (%p462_p2), %s768_s27, 256  ;;  %s1229_s20 = smov (%p462_p2), [#allocation8]  }
 0x218   : > { %p1106_p1 = scmp.ne.s32.totalorder (%p462_p2), %s768_s27, %s1105_s30  ;;  %s1109_s24 = sshll.u32 (%p462_p2), %s1229_s20, 4  ;;  %s1110_s24 = int_to_ptr.vmem [resolvable:$false] %s1109_s24 }
 0x219   : > { %s1111_s18 = scalar_lea.vmem (%p462_p2), %s1110_s24, 512  ;;  %p1112_p13 = scmp.lt.s32.totalorder (%p462_p2), %s768_s27, %s1110_s24 }
 0x21a   : >> { %504 = vrot.lane.b32.xlu1 %v1207_v4, %s1227_s5  ;;  %502 = vrot.lane.b32.xlu0 %v1211_v5, %s1227_s5  ;;  %p1107_p4 = pnand (%p462_p2), %p1106_p1, %p1368_p6  ;;  %p1113_p3 = scmp.lt.s32.totalorder (%p462_p2), %s1111_s18, %s1105_s30 }
 0x21c   : > { %p1108_p8 = pneg (%p462_p2), %p1107_p4  ;;  %p1114_p7 = por (%p462_p2), %p1113_p3, %p1112_p13 }
 0x21e   : >> { %514 = vrot.lane.b32.xlu1 %v1207_v4, %s1228_s6  ;;  %512 = vrot.lane.b32.xlu0 %v1211_v5, %s1228_s6  ;;  %p1115_p9 = pnand (%p462_p2), %p1114_p7, %p1108_p8 }
 0x284   : >> { %v493_v20 = vpop.permute.xlu1 %492  ;;  %v483_v38 = vpop.permute.xlu0 %482 }
 0x288   : >> { %v495_v25 = vpop.permute.xlu1 %494  ;;  %v485_v27 = vpop.permute.xlu0 %484 }
 0x289   : >> { %v496_v3 = vsel %vm269_vm1, %v493_v20, %v495_v25  ;;  %v497_v31 = vsel %vm269_vm1, %v495_v25, %v493_v20  ;;  %v486_v32 = vsel %vm240_vm0, %v483_v38, %v485_v27  ;;  %v487_v5 = vsel %vm240_vm0, %v485_v27, %v483_v38 }
 0x28a   : >> { %v488_v4 = vadd.f32 %v487_v5, %v1557_v29  ;;  %v489_v33 = vadd.f32 %v486_v32, %v1567_v30  ;;  %v498_v34 = vadd.f32 %v496_v3, %v1600_v47  ;;  %v499_v35 = vadd.f32 %v497_v31, %v1605_v48 }
 0x28c   : >> { %v490_v36 = vmin.f32 %v480_v26, %v488_v4  ;;  %v491_v37 = vmin.f32 %v481_v28, %v489_v33  ;;  %v505_v40 = vpop.permute.xlu1 %504  ;;  %v503_v41 = vpop.permute.xlu0 %502 }
 0x28d   : >> { %v506_v42 = vsel %vm298_vm2, %v503_v41, %v505_v40  ;;  %v507_v2 = vsel %vm298_vm2, %v505_v40, %v503_v41 }
 0x28e   : >> { %v500_v43 = vmin.f32 %v490_v36, %v498_v34  ;;  %v501_v44 = vmin.f32 %v491_v37, %v499_v35  ;;  %v508_v45 = vadd.f32 %v507_v2, %v1613_v52  ;;  %v509_v46 = vadd.f32 %v506_v42, %v1616_v53 }
 0x290   : >> { %v515_v49 = vpop.permute.xlu1 %514  ;;  %v513_v50 = vpop.permute.xlu0 %512  ;;  %v510_v1 = vmin.f32 %v500_v43, %v508_v45  ;;  %v511_v55 = vmin.f32 %v501_v44, %v509_v46 }
 0x291   : >> { %v516_v51 = vsel %vm327_vm4, %v513_v50, %v515_v49  ;;  %v517_v0 = vsel %vm327_vm4, %v515_v49, %v513_v50 }
 0x292   : >> { %v518_v56 = vadd.f32 %v516_v51, %v1625_v6  ;;  %v519_v57 = vadd.f32 %v517_v0, %v1628_v7 }
 0x294   : >> { %v1737_v58 = vmin.f32 %v510_v1, %v518_v56  ;;  %v1739_v59 = vmin.f32 %v511_v55, %v519_v57 }
 0x296   : >> { %534 = vrot.lane.b32.xlu0 %v1737_v58, %s1226_s4  ;;  %536 = vrot.lane.b32.xlu1 %v1739_v59, %s1226_s4  ;;  %v522_v60 = vrot.slane %v1737_v58, 7  ;;  %v523_v61 = vrot.slane %v1739_v59, 7  ;;  %v528_v10 = vrot.slane %v1737_v58, 1  ;;  %v529_v13 = vrot.slane %v1739_v59, 1 }
 0x298   : >> { %v524_v63 = vadd.f32 %v522_v60, %v1510_v39  ;;  %v525_v9 = vadd.f32 %v523_v61, %v1510_v39  ;;  %v530_v22 = vadd.f32 %v528_v10, %v1526_v54  ;;  %v531_v23 = vadd.f32 %v529_v13, %v1526_v54 }
 0x29a   : >> { %544 = vrot.lane.b32.xlu0 %v1737_v58, %s1225_s22  ;;  %546 = vrot.lane.b32.xlu1 %v1739_v59, %s1225_s22  ;;  %v526_v17 = vmin.f32 %v1737_v58, %v524_v63  ;;  %v527_v18 = vmin.f32 %v1739_v59, %v525_v9 }
 0x29c   : >> { %v532_v26 = vmin.f32 %v526_v17, %v530_v22  ;;  %v533_v27 = vmin.f32 %v527_v18, %v531_v23 }
 0x29e   : >> { %554 = vrot.lane.b32.xlu0 %v1737_v58, %s1227_s5  ;;  %556 = vrot.lane.b32.xlu1 %v1739_v59, %s1227_s5 }
 0x2a2   : >> { %564 = vrot.lane.b32.xlu0 %v1737_v58, %s1228_s6  ;;  %566 = vrot.lane.b32.xlu1 %v1739_v59, %s1228_s6 }
 0x308   : >> { %v535_v62 = vpop.permute.xlu0 %534  ;;  %v537_v8 = vpop.permute.xlu1 %536 }
 0x309   : >> { %v538_v14 = vsel %vm240_vm0, %v535_v62, %v537_v8  ;;  %v539_v16 = vsel %vm240_vm0, %v537_v8, %v535_v62 }
 0x30a   : >> { %v540_v24 = vadd.f32 %v539_v16, %v1557_v29  ;;  %v541_v25 = vadd.f32 %v538_v14, %v1567_v30 }
 0x30c   : >> { %v545_v19 = vpop.permute.xlu0 %544  ;;  %v547_v20 = vpop.permute.xlu1 %546  ;;  %v542_v33 = vmin.f32 %v532_v26, %v540_v24  ;;  %v543_v34 = vmin.f32 %v533_v27, %v541_v25 }
 0x30d   : >> { %v548_v38 = vsel %vm269_vm1, %v545_v19, %v547_v20  ;;  %v549_v21 = vsel %vm269_vm1, %v547_v20, %v545_v19 }
 0x30e   : >> { %v550_v28 = vadd.f32 %v548_v38, %v1600_v47  ;;  %v551_v3 = vadd.f32 %v549_v21, %v1605_v48 }
 0x310   : >> { %v555_v31 = vpop.permute.xlu0 %554  ;;  %v557_v32 = vpop.permute.xlu1 %556  ;;  %v552_v37 = vmin.f32 %v542_v33, %v550_v28  ;;  %v553_v40 = vmin.f32 %v543_v34, %v551_v3 }
 0x311   : >> { %v558_v5 = vsel %vm298_vm2, %v555_v31, %v557_v32  ;;  %v559_v4 = vsel %vm298_vm2, %v557_v32, %v555_v31 }
 0x312   : >> { %v560_v35 = vadd.f32 %v559_v4, %v1613_v52  ;;  %v561_v36 = vadd.f32 %v558_v5, %v1616_v53 }
 0x314   : >> { %v565_v41 = vpop.permute.xlu0 %564  ;;  %v567_v42 = vpop.permute.xlu1 %566  ;;  %v562_v44 = vmin.f32 %v552_v37, %v560_v35  ;;  %v563_v45 = vmin.f32 %v553_v40, %v561_v36 }
 0x315   : >> { %v568_v2 = vsel %vm327_vm4, %v565_v41, %v567_v42  ;;  %v569_v43 = vsel %vm327_vm4, %v567_v42, %v565_v41 }
 0x316   : >> { %v570_v46 = vadd.f32 %v568_v2, %v1625_v6  ;;  %v571_v49 = vadd.f32 %v569_v43, %v1628_v7 }
 0x318   : >> { %v1791_v5 = vmin.f32 %v562_v44, %v570_v46   ;;  %v1793_v4 = vmin.f32 %v563_v45, %v571_v49  }
 0x31a   : >> { %646 = vrot.lane.b32.xlu0 %v1791_v5, %s1226_s4  ;;  %648 = vrot.lane.b32.xlu1 %v1793_v4, %s1226_s4  ;;  %v574_v50 = vrot.slane %v1791_v5, 7  ;;  %v575_v51 = vrot.slane %v1793_v4, 7  ;;  %v580_v0 = vrot.slane %v1791_v5, 1  ;;  %v581_v1 = vrot.slane %v1793_v4, 1 }
 0x31c   : >> { %v638_v55 = vadd.f32 %v574_v50, %v1510_v39  ;;  %v639_v56 = vadd.f32 %v575_v51, %v1510_v39  ;;  %v642_v60 = vadd.f32 %v580_v0, %v1526_v54  ;;  %v643_v62 = vadd.f32 %v581_v1, %v1526_v54 }
 0x31d   : >> { %v576_v63 = vsub.f32 %v574_v50, %v1510_v39  ;;  %v577_v8 = vsub.f32 %v575_v51, %v1510_v39  ;;  %v582_v16 = vsub.f32 %v580_v0, %v1526_v54  ;;  %v583_v17 = vsub.f32 %v581_v1, %v1526_v54 }
 0x31e   : >> { %656 = vrot.lane.b32.xlu0 %v1791_v5, %s1225_s22  ;;  %658 = vrot.lane.b32.xlu1 %v1793_v4, %s1225_s22  ;;  %v640_v57 = vmin.f32 %v1791_v5, %v638_v55  ;;  %v641_v61 = vmin.f32 %v1793_v4, %v639_v56 }
 0x31f   : >> { %v578_v13 = vmax.f32 %v1791_v5, %v576_v63  ;;  %v579_v14 = vmax.f32 %v1793_v4, %v577_v8 }
 0x320   : >> { %v644_v9 = vmin.f32 %v640_v57, %v642_v60  ;;  %v645_v10 = vmin.f32 %v641_v61, %v643_v62 }
 0x321   : >> { %v1827_v18 = vmax.f32 %v578_v13, %v582_v16  ;;  %v1829_v19 = vmax.f32 %v579_v14, %v583_v17 }
 0x322   : >> { %666 = vrot.lane.b32.xlu0 %v1791_v5, %s1227_s5  ;;  %668 = vrot.lane.b32.xlu1 %v1793_v4, %s1227_s5 }
 0x326   : >> { %676 = vrot.lane.b32.xlu0 %v1791_v5, %s1228_s6  ;;  %678 = vrot.lane.b32.xlu1 %v1793_v4, %s1228_s6 }
 0x32a   : >> { %586 = vrot.lane.b32.xlu0 %v1827_v18, %s1226_s4  ;;  %588 = vrot.lane.b32.xlu1 %v1829_v19, %s1226_s4 }
 0x32e   : >> { %596 = vrot.lane.b32.xlu0 %v1827_v18, %s1225_s22  ;;  %598 = vrot.lane.b32.xlu1 %v1829_v19, %s1225_s22 }
 0x38c   : >> { %v647_v20 = vpop.permute.xlu0 %646  ;;  %v649_v38 = vpop.permute.xlu1 %648 }
 0x38d   : >> { %v650_v21 = vsel %vm240_vm0, %v647_v20, %v649_v38  ;;  %v651_v22 = vsel %vm240_vm0, %v649_v38, %v647_v20 }
 0x38e   : >> { %v652_v27 = vadd.f32 %v651_v22, %v1557_v29  ;;  %v653_v28 = vadd.f32 %v650_v21, %v1567_v30 }
 0x390   : >> { %v657_v23 = vpop.permute.xlu0 %656  ;;  %v659_v24 = vpop.permute.xlu1 %658  ;;  %v654_v36 = vmin.f32 %v644_v9, %v652_v27  ;;  %v655_v37 = vmin.f32 %v645_v10, %v653_v28 }
 0x391   : >> { %v660_v25 = vsel %vm269_vm1, %v657_v23, %v659_v24  ;;  %v661_v26 = vsel %vm269_vm1, %v659_v24, %v657_v23 }
 0x392   : >> { %v662_v3 = vadd.f32 %v660_v25, %v1600_v47  ;;  %v663_v31 = vadd.f32 %v661_v26, %v1605_v48 }
 0x394   : >> { %v667_v32 = vpop.permute.xlu0 %666  ;;  %v669_v33 = vpop.permute.xlu1 %668  ;;  %v664_v42 = vmin.f32 %v654_v36, %v662_v3  ;;  %v665_v2 = vmin.f32 %v655_v37, %v663_v31 }
 0x395   : >> { %v670_v34 = vsel %vm298_vm2, %v667_v32, %v669_v33  ;;  %v671_v35 = vsel %vm298_vm2, %v669_v33, %v667_v32 }
 0x396   : >> { %v672_v40 = vadd.f32 %v671_v35, %v1613_v52  ;;  %v673_v41 = vadd.f32 %v670_v34, %v1616_v53 }
 0x398   : >> { %v677_v43 = vpop.permute.xlu0 %676  ;;  %v679_v44 = vpop.permute.xlu1 %678  ;;  %v674_v49 = vmin.f32 %v664_v42, %v672_v40  ;;  %v675_v50 = vmin.f32 %v665_v2, %v673_v41 }
 0x399   : >> { %v680_v45 = vsel %vm327_vm4, %v677_v43, %v679_v44  ;;  %v681_v46 = vsel %vm327_vm4, %v679_v44, %v677_v43 }
 0x39a   : >> { %v682_v51 = vadd.f32 %v680_v45, %v1625_v6  ;;  %v683_v0 = vadd.f32 %v681_v46, %v1628_v7 }
 0x39c   : >> { %v684_v1 = vmin.f32 %v674_v49, %v682_v51  ;;  %v685_v55 = vmin.f32 %v675_v50, %v683_v0  ;;  %v587_v56 = vpop.permute.xlu0 %586  ;;  %v589_v57 = vpop.permute.xlu1 %588 }
 0x39d   : >> { %v591_v17 = vsel %vm240_vm0, %v589_v57, %v587_v56  ;;  %v590_v21 = vsel %vm240_vm0, %v587_v56, %v589_v57 }
 0x39e   : >> { %v686_v60 = vrot.slane %v684_v1, 7  ;;  %v692_v61 = vrot.slane %v684_v1, 1  ;;  %v687_v62 = vrot.slane %v685_v55, 7  ;;  %v693_v63 = vrot.slane %v685_v55, 1 }
 0x39f   : >> { %v592_v25 = vsub.f32 %v591_v17, %v1557_v29  ;;  %v593_v27 = vsub.f32 %v590_v21, %v1567_v30 }
 0x3a0   : >> { %v688_v8 = vsub.f32 %v686_v60, %v1510_v39  ;;  %v689_v9 = vsub.f32 %v687_v62, %v1510_v39  ;;  %v597_v10 = vpop.permute.xlu0 %596  ;;  %v599_v13 = vpop.permute.xlu1 %598  ;;  %v694_v16 = vsub.f32 %v692_v61, %v1526_v54  ;;  %v695_v38 = vsub.f32 %v693_v63, %v1526_v54 }
 0x3a1   : >> { %v600_v23 = vsel %vm269_vm1, %v597_v10, %v599_v13  ;;  %v601_v26 = vsel %vm269_vm1, %v599_v13, %v597_v10  ;;  %v594_v31 = vmax.f32 %v1827_v18, %v592_v25  ;;  %v595_v32 = vmax.f32 %v1829_v19, %v593_v27 }
 0x3a2   : >> { %v690_v14 = vmax.f32 %v684_v1, %v688_v8  ;;  %v691_v20 = vmax.f32 %v685_v55, %v689_v9  ;;  %v602_v28 = vsub.f32 %v600_v23, %v1600_v47  ;;  %v603_v3 = vsub.f32 %v601_v26, %v1605_v48 }
 0x3a4   : >> { %v696_v22 = vmax.f32 %v690_v14, %v694_v16  ;;  %v697_v24 = vmax.f32 %v691_v20, %v695_v38  ;;  %v604_v33 = vmax.f32 %v594_v31, %v602_v28  ;;  %v605_v34 = vmax.f32 %v595_v32, %v603_v3 }
 0x3a6   : >> { %698 = vrot.lane.b32.xlu0 %v696_v22, %s1226_s4  ;;  %700 = vrot.lane.b32.xlu1 %v697_v24, %s1226_s4 }
 0x3aa   : >> { %708 = vrot.lane.b32.xlu0 %v696_v22, %s1225_s22  ;;  %710 = vrot.lane.b32.xlu1 %v697_v24, %s1225_s22 }
 0x3ae   : >> { %606 = vrot.lane.b32.xlu0 %v604_v33, %s1227_s5  ;;  %608 = vrot.lane.b32.xlu1 %v605_v34, %s1227_s5 }
 0x3b2   : >> { %616 = vrot.lane.b32.xlu0 %v604_v33, %s1228_s6  ;;  %618 = vrot.lane.b32.xlu1 %v605_v34, %s1228_s6 }
 0x418   : >> { %v699_v35 = vpop.permute.xlu0 %698  ;;  %v701_v36 = vpop.permute.xlu1 %700 }
 0x419   : >> { %v702_v18 = vsel %vm240_vm0, %v699_v35, %v701_v36  ;;  %v703_v19 = vsel %vm240_vm0, %v701_v36, %v699_v35 }
 0x41a   : >> { %v704_v37 = vsub.f32 %v703_v19, %v1557_v29  ;;  %v705_v40 = vsub.f32 %v702_v18, %v1567_v30 }
 0x41c   : >> { %v709_v41 = vpop.permute.xlu0 %708  ;;  %v711_v42 = vpop.permute.xlu1 %710  ;;  %v706_v44 = vmax.f32 %v696_v22, %v704_v37  ;;  %v707_v45 = vmax.f32 %v697_v24, %v705_v40 }
 0x41d   : >> { %v712_v2 = vsel %vm269_vm1, %v709_v41, %v711_v42  ;;  %v713_v43 = vsel %vm269_vm1, %v711_v42, %v709_v41 }
 0x41e   : >> { %v714_v46 = vsub.f32 %v712_v2, %v1600_v47  ;;  %v715_v49 = vsub.f32 %v713_v43, %v1605_v48 }
 0x420   : >> { %v717_v50 = vmax.f32 %v707_v45, %v715_v49  ;;  %v716_v51 = vmax.f32 %v706_v44, %v714_v46  ;;  %v607_v0 = vpop.permute.xlu0 %606  ;;  %v609_v1 = vpop.permute.xlu1 %608 }
 0x421   : >> { %v610_v57 = vsel %vm298_vm2, %v607_v0, %v609_v1  ;;  %v611_v60 = vsel %vm298_vm2, %v609_v1, %v607_v0 }
 0x422   : >> { %720 = vrot.lane.b32.xlu1 %v717_v50, %s1227_s5  ;;  %718 = vrot.lane.b32.xlu0 %v716_v51, %s1227_s5  ;;  %v612_v63 = vsub.f32 %v611_v60, %v1613_v52  ;;  %v613_v8 = vsub.f32 %v610_v57, %v1616_v53 }
 0x424   : >> { %v617_v55 = vpop.permute.xlu0 %616  ;;  %v619_v56 = vpop.permute.xlu1 %618  ;;  %v614_v13 = vmax.f32 %v604_v33, %v612_v63  ;;  %v615_v14 = vmax.f32 %v605_v34, %v613_v8 }
 0x425   : >> { %v620_v61 = vsel %vm327_vm4, %v617_v55, %v619_v56  ;;  %v621_v62 = vsel %vm327_vm4, %v619_v56, %v617_v55 }
 0x426   : >> { %730 = vrot.lane.b32.xlu1 %v717_v50, %s1228_s6  ;;  %728 = vrot.lane.b32.xlu0 %v716_v51, %s1228_s6  ;;  %v622_v9 = vsub.f32 %v620_v61, %v1625_v6  ;;  %v623_v10 = vsub.f32 %v621_v62, %v1628_v7 }
 0x428   : >> { %v624_v16 = vmax.f32 %v614_v13, %v622_v9  ;;  %v625_v17 = vmax.f32 %v615_v14, %v623_v10 }
 0x42a   : >> { %v626_v20 = vsub.f32 %v1737_v58, %v624_v16  ;;  %v627_v38 = vsub.f32 %v1739_v59, %v625_v17 }
 0x42c   : >> { %v628_v21 = vmax.f32 %v626_v20, 0.0  ;;  %v629_v22 = vmax.f32 %v627_v38, 0.0 }
 0x42e   : >> { %v630_v23 = vmul.f32 %v1203_v11, %v628_v21  ;;  %v631_v24 = vmul.f32 %v1199_v12, %v629_v22 }
 0x430   : >> { %v632_v31 = vsub.f32 %v628_v21, %v630_v23  ;;  %v633_v59 = vsub.f32 %v629_v22, %v631_v24 }
 0x432   : >> { %v634_v40 = vmax.f32 %v632_v31, 0.0  ;;  %v635_v41 = vmax.f32 %v633_v59, 0.0 }
 0x434   : >> { %v636_v45 = vadd.f32 %v1203_v11, %v634_v40  ;;  %v637_v46 = vadd.f32 %v1199_v12, %v635_v41 }
 0x494   : >> { %v719_v25 = vpop.permute.xlu0 %718  ;;  %v721_v26 = vpop.permute.xlu1 %720 }
 0x495   : >> { %v722_v27 = vsel %vm298_vm2, %v719_v25, %v721_v26  ;;  %v723_v28 = vsel %vm298_vm2, %v721_v26, %v719_v25 }
 0x496   : >> { %v724_v3 = vsub.f32 %v723_v28, %v1613_v52  ;;  %v725_v58 = vsub.f32 %v722_v27, %v1616_v53 }
 0x498   : >> { %v729_v32 = vpop.permute.xlu0 %728  ;;  %v731_v33 = vpop.permute.xlu1 %730  ;;  %v726_v36 = vmax.f32 %v716_v51, %v724_v3  ;;  %v727_v18 = vmax.f32 %v717_v50, %v725_v58 }
 0x499   : >> { %v732_v34 = vsel %vm327_vm4, %v729_v32, %v731_v33  ;;  %v733_v35 = vsel %vm327_vm4, %v731_v33, %v729_v32 }
 0x49a   : >> { %v734_v19 = vsub.f32 %v732_v34, %v1625_v6  ;;  %v735_v37 = vsub.f32 %v733_v35, %v1628_v7 }
 0x49c   : >> { %v736_v42 = vmax.f32 %v726_v36, %v734_v19  ;;  %v737_v2 = vmax.f32 %v727_v18, %v735_v37 }
 0x49e   : >> { %v738_v43 = vsub.f32 %v1791_v5, %v736_v42  ;;  %v739_v44 = vsub.f32 %v1793_v4, %v737_v2 }
 0x4a0   : >> { %v740_v49 = vmax.f32 %v738_v43, 0.0  ;;  %v741_v0 = vmax.f32 %v739_v44, 0.0 }
 0x4a2   : >> { %v742_v51 = vmul.f32 %v740_v49, %v636_v45  ;;  %v743_v50 = vmul.f32 %v741_v0, %v637_v46 }
 0x4a4   : >> { %v744_v1 = vsub.f32 %v740_v49, %v742_v51  ;;  %v745_v55 = vsub.f32 %v741_v0, %v743_v50  ;;  %464 = sbr.rel (!%p462_p2) target bundleno = 529 (0x211), region = 92 }
 0x4a6   : >> { %v746_v56 = vmax.f32 %v744_v1, 0.0  ;;  %v747_v57 = vmax.f32 %v745_v55, 0.0 }
 0x4a8   : >> { %v748_v60 = vadd.f32 %v746_v56, %v636_v45   ;;  %v749_v61 = vadd.f32 %v747_v57, %v637_v46  }
 0x4aa   : >> { %v2020_v12 = vmov %v749_v61  ;;  %v2021_v11 = vmov %v748_v60  ;;  %750 = vst [vmem:[%s1676_s23] sm:$0xff] (%p462_p2), %v748_v60  ;;  %751 = vst [vmem:[%s1676_s23 + $0x8] sm:$0xff] (%p462_p2), %v749_v61 }
 0x4ab   : > { %1118 = shalt.err (!%p1115_p9)
}
 0x4ac   : > { %s1119_s16 = scalar_lea.hbm %s1956_s11, 256  ;;  %s1123_s23 = scalar_lea.hbm %s1997_s3, 1024 }
 0x4ad   : > { %p1120_p12 = scmp.ne.s32.totalorder %s1956_s11, %s1119_s16  ;;  %p1124_p10 = scmp.lt.u32.totalorder %s1956_s11, %s1997_s3 }
 0x4ae   : > { %p1125_p11 = scmp.lt.u32.totalorder %s1123_s23, %s1119_s16  ;;  %p1127_p1 = scmp.lt.u32.totalorder %s1119_s16, %s1956_s11 }
 0x4af   : > { %p1121_p5 = pnand %p1120_p12, %p1368_p6 }
 0x4b0   : > { %p1126_p2 = por %p1125_p11, %p1124_p10 }
 0x4b1   : > { %p1122_p0 = pneg %p1121_p5 }
 0x4b2   : > { %p1128_p4 = por %p1127_p1, %p1126_p2 }
 0x4b4   : > { %p1129_p8 = pnand %p1128_p4, %p1122_p0 }
 0x4b6   : > { %1132 = shalt.err (!%p1129_p8)
}
 0x4b7   : > { %913 = dma.vmem_to_hbm [thread:$0]  (%p1368_p6), %s768_s27, 256, %s1956_s11, %s753_s29  }
 0x4b8 PF: > { %p935_p13 = scmp.ge.s32.totalorder %s1195_s15, 2  ;;  %s779_s4 = sand.u32 1, %s1183_s12  }
 0x4b9   : > { %p2022_p3 = scmp.ne.s32.totalorder %s2002_s19, 0  ;;  %s780_s5 = scalar_lea.sflag [#allocation4], %s779_s4 }
 0x4bb   : > { %p927_p7 = pnand %p935_p13, %p2022_p3 }
 0x4bd   : > { %1178 = dma.done.wait (!%p927_p7), %s780_s5, 256  }
 0x4be   : > { %1180 = vsyncadd (!%p927_p7), %s780_s5, 4294967040  ;;  %p17_p9 = scmp.ge.s32.totalorder %s1305_s26, 6   ;;  %s2023_s12 = smov %s1187_s13 }
 0x4bf   : > { %s2024_s13 = smov %s1191_s14  ;;  %s2025_s14 = smov %s1364_s25 }
 0x4c0   : > { %s2026_s15 = smov %s1305_s26  ;;  %19 = sbr.rel (!%p17_p9) target bundleno = 6 (0x6), region = 103 }
 0x4c7   :  { %785 = vsyncpa [#allocation3], 1 }
 0x4c8   :  { %787 = vsyncpa [#allocation3 + $0x1], 1 }
 0x4c9   :  { %788 = vsyncpa [#allocation6], 1 }
 0x4ca   :  { %789 = vsyncpa [#allocation4], 1 }
 0x4cb   :  { %791 = vsyncpa [#allocation4 + $0x1], 1 }

</bundles_post_ra>
